<compile_context>
chip_gen: v7x
topology: tpu7x:2x2x1
jax: 0.10.0
libtpu: 0.0.40
codegen_flags: <defaults>
</compile_context>

<pallas_src>
import jax
import jax.numpy as jnp
from jax.experimental import pallas as pl
from jax.experimental.pallas import tpu as pltpu

BN_EPS = 1e-5
LANE = 128


def _round_up(x, m):
    return ((x + m - 1) // m) * m


# ----------------------------------------------------------------------------
# Kernel
# ----------------------------------------------------------------------------
def generator_kernel(x_ref, w1_ref, w2_ref, w3_ref, w4_ref, vec_ref, o_ref):
    # vec slab: (4, 3, Dmax) f32, rows = [bias, gamma, beta] per layer.
    vecs = vec_ref[...]

    def bn_relu(h, layer):
        # Single-pass batch stats + folded scale/shift.  Linear bias omitted:
        # BN's mean subtraction absorbs it exactly.
        d = h.shape[1]
        gamma = vecs[layer, 1:2, :d]
        beta = vecs[layer, 2:3, :d]
        mean = jnp.mean(h, axis=0, keepdims=True)
        meansq = jnp.mean(h * h, axis=0, keepdims=True)
        var = jnp.maximum(meansq - mean * mean, 0.0)
        scale = gamma * jax.lax.rsqrt(var + BN_EPS)   # rsqrt -> EUP slot
        shift = beta - mean * scale
        return jnp.maximum(h * scale + shift, 0.0)

    # Block 1
    h = jnp.dot(x_ref[...].astype(jnp.bfloat16), w1_ref[...],
                preferred_element_type=jnp.float32)
    h = bn_relu(h, 0)
    # Block 2
    h = jnp.dot(h.astype(jnp.bfloat16), w2_ref[...],
                preferred_element_type=jnp.float32)
    h = bn_relu(h, 1)
    # Block 3
    h = jnp.dot(h.astype(jnp.bfloat16), w3_ref[...],
                preferred_element_type=jnp.float32)
    h = bn_relu(h, 2)
    # Block 4: Linear -> Tanh (bias needed here, no BN)
    h = jnp.dot(h.astype(jnp.bfloat16), w4_ref[...],
                preferred_element_type=jnp.float32)
    h = h + vecs[3, 0:1, : h.shape[1]]
    o_ref[...] = jnp.tanh(h).astype(o_ref.dtype)


# ----------------------------------------------------------------------------
# Parameter packing (done once; zero-pads features to 128 lanes, bf16 weights,
# packs bias/gamma/beta of all layers into one slab)
# ----------------------------------------------------------------------------
def pack_params(params):
    dims_in = [params[f"w{i}"].shape[0] for i in (1, 2, 3, 4)]
    dims_out = [params[f"w{i}"].shape[1] for i in (1, 2, 3, 4)]
    pads_out = [_round_up(d, LANE) for d in dims_out]
    pads_in = [dims_in[0]] + pads_out[:3]
    dmax = max(pads_out)

    ws = []
    for i in range(4):
        wp = jnp.zeros((pads_in[i], pads_out[i]), jnp.float32)
        wp = wp.at[: dims_in[i], : dims_out[i]].set(params[f"w{i + 1}"])
        ws.append(wp.astype(jnp.bfloat16))

    slab = jnp.zeros((4, 3, dmax), jnp.float32)
    for i in range(4):
        d = dims_out[i]
        slab = slab.at[i, 0, :d].set(params[f"b{i + 1}"].reshape(-1))
        if i < 3:  # padded columns keep gamma=0 / beta=0 -> padded lanes stay 0
            slab = slab.at[i, 1, :d].set(params[f"g{i + 1}"].reshape(-1))
            slab = slab.at[i, 2, :d].set(params[f"be{i + 1}"].reshape(-1))

    return {"ws": tuple(ws), "slab": slab, "n_out": dims_out[3],
            "pads_out": tuple(pads_out)}


# ----------------------------------------------------------------------------
# Wrapper
# ----------------------------------------------------------------------------
def generator_forward(noise, packed):
    n = noise.shape[0]
    ws, slab = packed["ws"], packed["slab"]
    d4_pad = packed["pads_out"][3]
    dmax = max(packed["pads_out"])

    args = (noise,) + ws + (slab,)

    def full_spec(a):
        # Whole array resident in VMEM, single grid point.
        return pl.BlockSpec(a.shape, lambda: (0,) * a.ndim)

    # VMEM budget from the actual footprint (double-buffered I/O + live
    # activation temporaries), capped at 48 MiB to leave headroom on v7x.
    param_bytes = sum(int(a.size) * a.dtype.itemsize for a in args)
    out_bytes = n * d4_pad * 4
    act_bytes = 10 * n * dmax  # generous: f32 + bf16 live activation temps
    vmem_limit = min(max(2 * (param_bytes + out_bytes) + act_bytes + (8 << 20),
                         16 << 20), 48 << 20)

    out_padded = pl.pallas_call(
        generator_kernel,
        out_shape=jax.ShapeDtypeStruct((n, d4_pad), jnp.float32),
        grid=(),
        in_specs=[full_spec(a) for a in args],
        out_specs=pl.BlockSpec((n, d4_pad), lambda: (0, 0)),
        compiler_params=pltpu.CompilerParams(vmem_limit_bytes=int(vmem_limit)),
    )(*args)
    # Slice the lane-padded output back to the true feature count.
    return out_padded[:, : packed["n_out"]]


# ----------------------------------------------------------------------------
# Synthetic parameter init (shapes match the PyTorch module; weights stored
# transposed as (in_features, out_features) so y = x @ W + b)
# ----------------------------------------------------------------------------
def init_params(key, z_dim, hidden_dim, n_features_out):
    dims = [z_dim, hidden_dim * 4, hidden_dim * 2, hidden_dim, n_features_out]
    params = {}
    keys = jax.random.split(key, 8)
    for i in range(4):
        fan_in, fan_out = dims[i], dims[i + 1]
        bound = 1.0 / jnp.sqrt(fan_in)
        params[f"w{i + 1}"] = jax.random.uniform(
            keys[2 * i], (fan_in, fan_out), minval=-bound, maxval=bound,
            dtype=jnp.float32)
        params[f"b{i + 1}"] = jax.random.uniform(
            keys[2 * i + 1], (fan_out,), minval=-bound, maxval=bound,
            dtype=jnp.float32)
        if i < 3:  # BN only on the first three blocks
            params[f"g{i + 1}"] = jnp.ones((fan_out,), jnp.float32)
            params[f"be{i + 1}"] = jnp.zeros((fan_out,), jnp.float32)
    return params


# ----------------------------------------------------------------------------
# References
# ----------------------------------------------------------------------------
def generator_reference(noise, params):
    """Pure-f32 PyTorch-semantics reference (with biases, two-pass variance)."""
    h = noise
    for i in range(3):
        h = h @ params[f"w{i + 1}"] + params[f"b{i + 1}"]
        mean = jnp.mean(h, axis=0, keepdims=True)
        var = jnp.mean((h - mean) ** 2, axis=0, keepdims=True)
        h = (h - mean) * jax.lax.rsqrt(var + BN_EPS) * params[f"g{i + 1}"] \
            + params[f"be{i + 1}"]
        h = jnp.maximum(h, 0.0)
    h = h @ params["w4"] + params["b4"]
    return jnp.tanh(h)


def generator_reference_mirrored(noise, packed):
    """Pure-JAX reference mirroring the kernel's exact numerics (bf16 matmul,
    single-pass variance, folded BN, bias absorbed by BN)."""
    ws, slab = packed["ws"], packed["slab"]
    h = jnp.dot(noise.astype(jnp.bfloat16), ws[0],
                preferred_element_type=jnp.float32)
    for layer in range(3):
        d = h.shape[1]
        mean = jnp.mean(h, axis=0, keepdims=True)
        meansq = jnp.mean(h * h, axis=0, keepdims=True)
        var = jnp.maximum(meansq - mean * mean, 0.0)
        scale = slab[layer, 1:2, :d] * jax.lax.rsqrt(var + BN_EPS)
        shift = slab[layer, 2:3, :d] - mean * scale
        h = jnp.maximum(h * scale + shift, 0.0)
        h = jnp.dot(h.astype(jnp.bfloat16), ws[layer + 1],
                    preferred_element_type=jnp.float32)
    h = h + slab[3, 0:1, : h.shape[1]]
    return jnp.tanh(h)[:, : packed["n_out"]]


# ----------------------------------------------------------------------------
if __name__ == "__main__":
    # Module-consistent shapes: noise is (n_samples, z_dim).  Batch chosen as a
    # multiple of 8 (>=256) so the MXU M-dim is non-trivial, per perf review.
    n_samples, z_dim, hidden_dim, n_features_out = 256, 16, 32, 8

    key = jax.random.PRNGKey(0)
    k_noise, k_params = jax.random.split(key)
    noise = jax.random.normal(k_noise, (n_samples, z_dim), dtype=jnp.float32)
    params = init_params(k_params, z_dim, hidden_dim, n_features_out)
    packed = pack_params(params)

    out = generator_forward(noise, packed)
    out = jax.block_until_ready(out)
    assert out.shape == (n_samples, n_features_out)

    # Tight check: same numerics (bf16 matmul, folded single-pass BN) in XLA.
    ref_exact = generator_reference_mirrored(noise, packed)
    assert jnp.allclose(out, ref_exact, atol=5e-3, rtol=5e-3), \
        "mismatch vs mirrored (bf16) reference"

    # Semantics check: full-precision PyTorch-style forward (bf16 tolerance).
    ref_torch = generator_reference(noise, params)
    assert jnp.allclose(out, ref_torch, atol=2e-2, rtol=2e-2), \
        "mismatch vs f32 PyTorch-semantics reference"

    print("KERNEL_OK")
</pallas_src>

<mosaic_0001>
module attributes {stable_mosaic.version = 11 : i64} {
  func.func @generator_kernel(%arg0: memref<256x16xf32, #tpu.memory_space<vmem>>, %arg1: memref<16x128xbf16, #tpu.memory_space<vmem>>, %arg2: memref<128x128xbf16, #tpu.memory_space<vmem>>, %arg3: memref<128x128xbf16, #tpu.memory_space<vmem>>, %arg4: memref<128x128xbf16, #tpu.memory_space<vmem>>, %arg5: memref<4x3x128xf32, #tpu.memory_space<vmem>>, %arg6: memref<256x128xf32, #tpu.memory_space<vmem>>) attributes {dimension_semantics = [], scalar_prefetch = 0 : i64, scratch_operands = 0 : i64, tpu.core_type = #tpu.core_type<tc>} {
    %c0 = arith.constant 0 : index
    %c0_0 = arith.constant 0 : index
    %c0_1 = arith.constant 0 : index
    %0 = vector.load %arg5[%c0, %c0_0, %c0_1] : memref<4x3x128xf32, #tpu.memory_space<vmem>>, vector<4x3x128xf32>
    %c0_2 = arith.constant 0 : index
    %c0_3 = arith.constant 0 : index
    %1 = vector.load %arg0[%c0_2, %c0_3] : memref<256x16xf32, #tpu.memory_space<vmem>>, vector<256x16xf32>
    %2 = arith.truncf %1 : vector<256x16xf32> to vector<256x16xbf16>
    %c0_4 = arith.constant 0 : index
    %c0_5 = arith.constant 0 : index
    %3 = vector.load %arg1[%c0_4, %c0_5] : memref<16x128xbf16, #tpu.memory_space<vmem>>, vector<16x128xbf16>
    %cst = arith.constant dense<0.000000e+00> : vector<256x128xf32>
    %4 = tpu.matmul %2, %3, %cst {dimension_numbers = #tpu.dot_dimension_numbers<[1], [0], [0], [1], [0, 0, 1, 1], [], []>} : vector<256x16xbf16>, vector<16x128xbf16>, vector<256x128xf32> -> vector<256x128xf32>
    %5 = vector.extract_strided_slice %0 {offsets = [0, 1, 0], sizes = [1, 1, 128], strides = [1, 1, 1]} : vector<4x3x128xf32> to vector<1x1x128xf32>
    %6 = vector.shape_cast %5 : vector<1x1x128xf32> to vector<1x128xf32>
    %7 = vector.extract_strided_slice %0 {offsets = [0, 2, 0], sizes = [1, 1, 128], strides = [1, 1, 1]} : vector<4x3x128xf32> to vector<1x1x128xf32>
    %8 = vector.shape_cast %7 : vector<1x1x128xf32> to vector<1x128xf32>
    %cst_6 = arith.constant dense<0.000000e+00> : vector<128xf32>
    %9 = vector.multi_reduction <add>, %4, %cst_6 [0] : vector<256x128xf32> to vector<128xf32>
    %10 = vector.shape_cast %9 : vector<128xf32> to vector<1x128xf32>
    %cst_7 = arith.constant 2.560000e+02 : f32
    %11 = vector.broadcast %cst_7 : f32 to vector<1x128xf32>
    %12 = arith.divf %10, %11 : vector<1x128xf32>
    %13 = arith.mulf %4, %4 : vector<256x128xf32>
    %cst_8 = arith.constant dense<0.000000e+00> : vector<128xf32>
    %14 = vector.multi_reduction <add>, %13, %cst_8 [0] : vector<256x128xf32> to vector<128xf32>
    %15 = vector.shape_cast %14 : vector<128xf32> to vector<1x128xf32>
    %cst_9 = arith.constant 2.560000e+02 : f32
    %16 = vector.broadcast %cst_9 : f32 to vector<1x128xf32>
    %17 = arith.divf %15, %16 : vector<1x128xf32>
    %18 = arith.mulf %12, %12 : vector<1x128xf32>
    %19 = arith.subf %17, %18 : vector<1x128xf32>
    %cst_10 = arith.constant 0.000000e+00 : f32
    %20 = vector.broadcast %cst_10 : f32 to vector<1x128xf32>
    %21 = arith.maximumf %19, %20 : vector<1x128xf32>
    %cst_11 = arith.constant 9.99999974E-6 : f32
    %22 = vector.broadcast %cst_11 : f32 to vector<1x128xf32>
    %23 = arith.addf %21, %22 : vector<1x128xf32>
    %24 = math.rsqrt %23 : vector<1x128xf32>
    %25 = arith.mulf %6, %24 : vector<1x128xf32>
    %26 = arith.mulf %12, %25 : vector<1x128xf32>
    %27 = arith.subf %8, %26 : vector<1x128xf32>
    %28 = vector.broadcast %25 : vector<1x128xf32> to vector<256x128xf32>
    %29 = arith.mulf %4, %28 : vector<256x128xf32>
    %30 = vector.broadcast %27 : vector<1x128xf32> to vector<256x128xf32>
    %31 = arith.addf %29, %30 : vector<256x128xf32>
    %cst_12 = arith.constant 0.000000e+00 : f32
    %32 = vector.broadcast %cst_12 : f32 to vector<256x128xf32>
    %33 = arith.maximumf %31, %32 : vector<256x128xf32>
    %34 = arith.truncf %33 : vector<256x128xf32> to vector<256x128xbf16>
    %c0_13 = arith.constant 0 : index
    %c0_14 = arith.constant 0 : index
    %35 = vector.load %arg2[%c0_13, %c0_14] : memref<128x128xbf16, #tpu.memory_space<vmem>>, vector<128x128xbf16>
    %cst_15 = arith.constant dense<0.000000e+00> : vector<256x128xf32>
    %36 = tpu.matmul %34, %35, %cst_15 {dimension_numbers = #tpu.dot_dimension_numbers<[1], [0], [0], [1], [0, 0, 1, 1], [], []>} : vector<256x128xbf16>, vector<128x128xbf16>, vector<256x128xf32> -> vector<256x128xf32>
    %37 = vector.extract_strided_slice %0 {offsets = [1, 1, 0], sizes = [1, 1, 128], strides = [1, 1, 1]} : vector<4x3x128xf32> to vector<1x1x128xf32>
    %38 = vector.shape_cast %37 : vector<1x1x128xf32> to vector<1x128xf32>
    %39 = vector.extract_strided_slice %0 {offsets = [1, 2, 0], sizes = [1, 1, 128], strides = [1, 1, 1]} : vector<4x3x128xf32> to vector<1x1x128xf32>
    %40 = vector.shape_cast %39 : vector<1x1x128xf32> to vector<1x128xf32>
    %cst_16 = arith.constant dense<0.000000e+00> : vector<128xf32>
    %41 = vector.multi_reduction <add>, %36, %cst_16 [0] : vector<256x128xf32> to vector<128xf32>
    %42 = vector.shape_cast %41 : vector<128xf32> to vector<1x128xf32>
    %cst_17 = arith.constant 2.560000e+02 : f32
    %43 = vector.broadcast %cst_17 : f32 to vector<1x128xf32>
    %44 = arith.divf %42, %43 : vector<1x128xf32>
    %45 = arith.mulf %36, %36 : vector<256x128xf32>
    %cst_18 = arith.constant dense<0.000000e+00> : vector<128xf32>
    %46 = vector.multi_reduction <add>, %45, %cst_18 [0] : vector<256x128xf32> to vector<128xf32>
    %47 = vector.shape_cast %46 : vector<128xf32> to vector<1x128xf32>
    %cst_19 = arith.constant 2.560000e+02 : f32
    %48 = vector.broadcast %cst_19 : f32 to vector<1x128xf32>
    %49 = arith.divf %47, %48 : vector<1x128xf32>
    %50 = arith.mulf %44, %44 : vector<1x128xf32>
    %51 = arith.subf %49, %50 : vector<1x128xf32>
    %cst_20 = arith.constant 0.000000e+00 : f32
    %52 = vector.broadcast %cst_20 : f32 to vector<1x128xf32>
    %53 = arith.maximumf %51, %52 : vector<1x128xf32>
    %cst_21 = arith.constant 9.99999974E-6 : f32
    %54 = vector.broadcast %cst_21 : f32 to vector<1x128xf32>
    %55 = arith.addf %53, %54 : vector<1x128xf32>
    %56 = math.rsqrt %55 : vector<1x128xf32>
    %57 = arith.mulf %38, %56 : vector<1x128xf32>
    %58 = arith.mulf %44, %57 : vector<1x128xf32>
    %59 = arith.subf %40, %58 : vector<1x128xf32>
    %60 = vector.broadcast %57 : vector<1x128xf32> to vector<256x128xf32>
    %61 = arith.mulf %36, %60 : vector<256x128xf32>
    %62 = vector.broadcast %59 : vector<1x128xf32> to vector<256x128xf32>
    %63 = arith.addf %61, %62 : vector<256x128xf32>
    %cst_22 = arith.constant 0.000000e+00 : f32
    %64 = vector.broadcast %cst_22 : f32 to vector<256x128xf32>
    %65 = arith.maximumf %63, %64 : vector<256x128xf32>
    %66 = arith.truncf %65 : vector<256x128xf32> to vector<256x128xbf16>
    %c0_23 = arith.constant 0 : index
    %c0_24 = arith.constant 0 : index
    %67 = vector.load %arg3[%c0_23, %c0_24] : memref<128x128xbf16, #tpu.memory_space<vmem>>, vector<128x128xbf16>
    %cst_25 = arith.constant dense<0.000000e+00> : vector<256x128xf32>
    %68 = tpu.matmul %66, %67, %cst_25 {dimension_numbers = #tpu.dot_dimension_numbers<[1], [0], [0], [1], [0, 0, 1, 1], [], []>} : vector<256x128xbf16>, vector<128x128xbf16>, vector<256x128xf32> -> vector<256x128xf32>
    %69 = vector.extract_strided_slice %0 {offsets = [2, 1, 0], sizes = [1, 1, 128], strides = [1, 1, 1]} : vector<4x3x128xf32> to vector<1x1x128xf32>
    %70 = vector.shape_cast %69 : vector<1x1x128xf32> to vector<1x128xf32>
    %71 = vector.extract_strided_slice %0 {offsets = [2, 2, 0], sizes = [1, 1, 128], strides = [1, 1, 1]} : vector<4x3x128xf32> to vector<1x1x128xf32>
    %72 = vector.shape_cast %71 : vector<1x1x128xf32> to vector<1x128xf32>
    %cst_26 = arith.constant dense<0.000000e+00> : vector<128xf32>
    %73 = vector.multi_reduction <add>, %68, %cst_26 [0] : vector<256x128xf32> to vector<128xf32>
    %74 = vector.shape_cast %73 : vector<128xf32> to vector<1x128xf32>
    %cst_27 = arith.constant 2.560000e+02 : f32
    %75 = vector.broadcast %cst_27 : f32 to vector<1x128xf32>
    %76 = arith.divf %74, %75 : vector<1x128xf32>
    %77 = arith.mulf %68, %68 : vector<256x128xf32>
    %cst_28 = arith.constant dense<0.000000e+00> : vector<128xf32>
    %78 = vector.multi_reduction <add>, %77, %cst_28 [0] : vector<256x128xf32> to vector<128xf32>
    %79 = vector.shape_cast %78 : vector<128xf32> to vector<1x128xf32>
    %cst_29 = arith.constant 2.560000e+02 : f32
    %80 = vector.broadcast %cst_29 : f32 to vector<1x128xf32>
    %81 = arith.divf %79, %80 : vector<1x128xf32>
    %82 = arith.mulf %76, %76 : vector<1x128xf32>
    %83 = arith.subf %81, %82 : vector<1x128xf32>
    %cst_30 = arith.constant 0.000000e+00 : f32
    %84 = vector.broadcast %cst_30 : f32 to vector<1x128xf32>
    %85 = arith.maximumf %83, %84 : vector<1x128xf32>
    %cst_31 = arith.constant 9.99999974E-6 : f32
    %86 = vector.broadcast %cst_31 : f32 to vector<1x128xf32>
    %87 = arith.addf %85, %86 : vector<1x128xf32>
    %88 = math.rsqrt %87 : vector<1x128xf32>
    %89 = arith.mulf %70, %88 : vector<1x128xf32>
    %90 = arith.mulf %76, %89 : vector<1x128xf32>
    %91 = arith.subf %72, %90 : vector<1x128xf32>
    %92 = vector.broadcast %89 : vector<1x128xf32> to vector<256x128xf32>
    %93 = arith.mulf %68, %92 : vector<256x128xf32>
    %94 = vector.broadcast %91 : vector<1x128xf32> to vector<256x128xf32>
    %95 = arith.addf %93, %94 : vector<256x128xf32>
    %cst_32 = arith.constant 0.000000e+00 : f32
    %96 = vector.broadcast %cst_32 : f32 to vector<256x128xf32>
    %97 = arith.maximumf %95, %96 : vector<256x128xf32>
    %98 = arith.truncf %97 : vector<256x128xf32> to vector<256x128xbf16>
    %c0_33 = arith.constant 0 : index
    %c0_34 = arith.constant 0 : index
    %99 = vector.load %arg4[%c0_33, %c0_34] : memref<128x128xbf16, #tpu.memory_space<vmem>>, vector<128x128xbf16>
    %cst_35 = arith.constant dense<0.000000e+00> : vector<256x128xf32>
    %100 = tpu.matmul %98, %99, %cst_35 {dimension_numbers = #tpu.dot_dimension_numbers<[1], [0], [0], [1], [0, 0, 1, 1], [], []>} : vector<256x128xbf16>, vector<128x128xbf16>, vector<256x128xf32> -> vector<256x128xf32>
    %101 = vector.extract_strided_slice %0 {offsets = [3, 0, 0], sizes = [1, 1, 128], strides = [1, 1, 1]} : vector<4x3x128xf32> to vector<1x1x128xf32>
    %102 = vector.shape_cast %101 : vector<1x1x128xf32> to vector<1x128xf32>
    %103 = vector.broadcast %102 : vector<1x128xf32> to vector<256x128xf32>
    %104 = arith.addf %100, %103 : vector<256x128xf32>
    %105 = math.tanh %104 : vector<256x128xf32>
    %c0_36 = arith.constant 0 : index
    %c0_37 = arith.constant 0 : index
    %106 = vector.load %arg6[%c0_36, %c0_37] : memref<256x128xf32, #tpu.memory_space<vmem>>, vector<256x128xf32>
    tpu.vector_store %arg6[%c0_36, %c0_37], %105 {strides = array<i32>} : memref<256x128xf32, #tpu.memory_space<vmem>>, vector<256x128xf32>,
    return
  }
}

</mosaic_0001>

<bundles_post_ra>
// kernel: tpu_custom_call.1
= control target key start
LH: loop header
LB: loop body
LE: loop exit
PB: predicated region body
PF: predicated region fallthrough
CT: control target
= control target key end

     0   :  { %vm85_vm0 = vcmask 130048   ;;  %s3089_s0 = inlined_call_operand.vmem [shape: f32[256,16], index: 0, kind: input, shape index: {}]   ;;  %s3090_s1 = inlined_call_operand.vmem [shape: bf16[16,128], index: 1, kind: input, shape index: {}]   ;;  %s3091_s2 = inlined_call_operand.vmem [shape: bf16[128,128], index: 2, kind: input, shape index: {}]   ;;  %s3092_s3 = inlined_call_operand.vmem [shape: bf16[128,128], index: 3, kind: input, shape index: {}]   ;;  %s3093_s4 = inlined_call_operand.vmem [shape: bf16[128,128], index: 4, kind: input, shape index: {}]   ;;  %s3094_s5 = inlined_call_operand.vmem [shape: f32[4,3,128], index: 5, kind: input, shape index: {}]   ;;  %s3095_s6 = inlined_call_operand.hbm [shape: f32[256,128], index: 6, kind: output, shape index: {}]  }
   0x1   :  { %v2099_v0 = vld [vmem:[%s3090_s1] sm:$0xff]   ;;  %v30_v2 = vld [vmem:[%s3089_s0 + $0x8] sm:$0xff]  ;;  %v31_v3 = vld [vmem:[%s3089_s0 + $0x10] sm:$0xff] }
   0x2   :  { %v29_v1 = vld [vmem:[%s3089_s0] sm:$0xff]  ;;  %1902 = vmatprep.subr.bf16.mxu0 %v2099_v0  ;;  %v32_v5 = vld [vmem:[%s3089_s0 + $0x18] sm:$0xff]  ;;  %v34_v7 = vld [vmem:[%s3089_s0 + $0x28] sm:$0xff] }
   0x3   :  { %v61_v4 = vpack.c.bf16 %v30_v2, %v29_v1  ;;  %v33_v6 = vld [vmem:[%s3089_s0 + $0x20] sm:$0xff]  ;;  %1903 = vmatpush3.bf16.msra.mxu0 %v2099_v0  ;;  %v62_v8 = vpack.c.bf16 %v32_v5, %v31_v3  ;;  %v35_v10 = vld [vmem:[%s3089_s0 + $0x30] sm:$0xff]  ;;  %v36_v11 = vld [vmem:[%s3089_s0 + $0x38] sm:$0xff] }
   0x4   :  { %v63_v9 = vpack.c.bf16 %v34_v7, %v33_v6  ;;  %v37_v12 = vld [vmem:[%s3089_s0 + $0x40] sm:$0xff]  ;;  %v38_v13 = vld [vmem:[%s3089_s0 + $0x48] sm:$0xff]  ;;  %v64_v14 = vpack.c.bf16 %v36_v11, %v35_v10  ;;  %v39_v16 = vld [vmem:[%s3089_s0 + $0x50] sm:$0xff] }
   0x5   :  { %1904 = vmatprep.mubr.msk.bf16.mxu0 %vm85_vm0, %v61_v4  ;;  %v65_v15 = vpack.c.bf16 %v38_v13, %v37_v12  ;;  %v40_v17 = vld [vmem:[%s3089_s0 + $0x58] sm:$0xff]  ;;  %v41_v18 = vld [vmem:[%s3089_s0 + $0x60] sm:$0xff]  ;;  %v42_v19 = vld [vmem:[%s3089_s0 + $0x68] sm:$0xff] }
   0x6   :  { %1905 = vmatmul.mubr.msk.bf16.vlgmr.msra.gmra.mrb[0].mxu0 %vm85_vm0, %v62_v8  ;;  %v66_v20 = vpack.c.bf16 %v40_v17, %v39_v16  ;;  %v67_v21 = vpack.c.bf16 %v42_v19, %v41_v18  ;;  %v43_v22 = vld [vmem:[%s3089_s0 + $0x70] sm:$0xff]  ;;  %v44_v23 = vld [vmem:[%s3089_s0 + $0x78] sm:$0xff]  ;;  %v45_v24 = vld [vmem:[%s3089_s0 + $0x80] sm:$0xff] }
   0x7   :  { %1908 = vmatprep.mubr.msk.bf16.mxu0 %vm85_vm0, %v63_v9  ;;  %v46_v25 = vld [vmem:[%s3089_s0 + $0x88] sm:$0xff]  ;;  %v68_v26 = vpack.c.bf16 %v44_v23, %v43_v22 }
   0x8   :  { %v69_v27 = vpack.c.bf16 %v46_v25, %v45_v24 }
   0xe   :  { %1909 = vmatmul.mubr.msk.bf16.gmra.mrb[4].mxu0 %vm85_vm0, %v64_v14 }
   0xf   :  { %1912 = vmatprep.mubr.msk.bf16.mxu0 %vm85_vm0, %v65_v15 }
  0x16   :  { %1913 = vmatmul.mubr.msk.bf16.gmra.mrb[8].mxu0 %vm85_vm0, %v66_v20 }
  0x17   :  { %1916 = vmatprep.mubr.msk.bf16.mxu0 %vm85_vm0, %v67_v21 }
  0x18   :  { %11 = vsyncpa [#allocation3], 0  ;;  %v47_v28 = vld [vmem:[%s3089_s0 + $0x90] sm:$0xff]  ;;  %v48_v29 = vld [vmem:[%s3089_s0 + $0x98] sm:$0xff] }
  0x19   :  { %v49_v30 = vld [vmem:[%s3089_s0 + $0xa0] sm:$0xff]  ;;  %v50_v31 = vld [vmem:[%s3089_s0 + $0xa8] sm:$0xff]  ;;  %v70_v32 = vpack.c.bf16 %v48_v29, %v47_v28  ;;  %v51_v34 = vld [vmem:[%s3089_s0 + $0xb0] sm:$0xff] }
  0x1a   :  { %v71_v33 = vpack.c.bf16 %v50_v31, %v49_v30  ;;  %v52_v35 = vld [vmem:[%s3089_s0 + $0xb8] sm:$0xff]  ;;  %v53_v36 = vld [vmem:[%s3089_s0 + $0xc0] sm:$0xff]  ;;  %v54_v37 = vld [vmem:[%s3089_s0 + $0xc8] sm:$0xff] }
  0x1b   :  { %v72_v38 = vpack.c.bf16 %v52_v35, %v51_v34  ;;  %v73_v39 = vpack.c.bf16 %v54_v37, %v53_v36  ;;  %v55_v40 = vld [vmem:[%s3089_s0 + $0xd0] sm:$0xff]  ;;  %v56_v41 = vld [vmem:[%s3089_s0 + $0xd8] sm:$0xff]  ;;  %v57_v42 = vld [vmem:[%s3089_s0 + $0xe0] sm:$0xff] }
  0x1c   :  { %v58_v43 = vld [vmem:[%s3089_s0 + $0xe8] sm:$0xff]  ;;  %v74_v44 = vpack.c.bf16 %v56_v41, %v55_v40  ;;  %v59_v46 = vld [vmem:[%s3089_s0 + $0xf0] sm:$0xff]  ;;  %v60_v47 = vld [vmem:[%s3089_s0 + $0xf8] sm:$0xff] }
  0x1d   :  { %v75_v45 = vpack.c.bf16 %v58_v43, %v57_v42  ;;  %v76_v48 = vpack.c.bf16 %v60_v47, %v59_v46  ;;  %v2100_v49 = vld [vmem:[%s3091_s2] sm:$0xff]   ;;  %v2101_v50 = vld [vmem:[%s3091_s2 + $0x8] sm:$0xff]   ;;  %v2102_v51 = vld [vmem:[%s3091_s2 + $0x10] sm:$0xff]  }
  0x1e   :  { %1917 = vmatmul.mubr.msk.bf16.gmra.mrb[12].mxu0 %vm85_vm0, %v68_v26  ;;  %1936 = vmatprep.subr.bf16.mxu1 %v2100_v49  ;;  %v2103_v52 = vld [vmem:[%s3091_s2 + $0x18] sm:$0xff]   ;;  %v2104_v53 = vld [vmem:[%s3091_s2 + $0x20] sm:$0xff]   ;;  %v2105_v54 = vld [vmem:[%s3091_s2 + $0x28] sm:$0xff]  }
  0x1f   :  { %1920 = vmatprep.mubr.msk.bf16.mxu0 %vm85_vm0, %v69_v27  ;;  %1937 = vmatpush3.bf16.msra.mxu1 %v2100_v49  ;;  %v2106_v55 = vld [vmem:[%s3091_s2 + $0x30] sm:$0xff]   ;;  %v2107_v56 = vld [vmem:[%s3091_s2 + $0x38] sm:$0xff]  }
  0x20   :  { %1938 = vmatprep.subr.bf16.mxu1 %v2101_v50 }
  0x23   :  { %1939 = vmatpush3.bf16.msra.mxu1 %v2101_v50 }
  0x24   :  { %1940 = vmatprep.subr.bf16.mxu1 %v2102_v51 }
  0x26   :  { %1921 = vmatmul.mubr.msk.bf16.gmra.mrb[16].mxu0 %vm85_vm0, %v70_v32 }
  0x27   :  { %1924 = vmatprep.mubr.msk.bf16.mxu0 %vm85_vm0, %v71_v33  ;;  %1941 = vmatpush3.bf16.msra.mxu1 %v2102_v51 }
  0x28   :  { %1942 = vmatprep.subr.bf16.mxu1 %v2103_v52 }
  0x2b   :  { %1943 = vmatpush3.bf16.msra.mxu1 %v2103_v52 }
  0x2c   :  { %1944 = vmatprep.subr.bf16.mxu1 %v2104_v53 }
  0x2e   :  { %1925 = vmatmul.mubr.msk.bf16.gmra.mrb[20].mxu0 %vm85_vm0, %v72_v38 }
  0x2f   :  { %1928 = vmatprep.mubr.msk.bf16.mxu0 %vm85_vm0, %v73_v39  ;;  %1945 = vmatpush3.bf16.msra.mxu1 %v2104_v53 }
  0x30   :  { %1946 = vmatprep.subr.bf16.mxu1 %v2105_v54 }
  0x33   :  { %1947 = vmatpush3.bf16.msra.mxu1 %v2105_v54 }
  0x34   :  { %1948 = vmatprep.subr.bf16.mxu1 %v2106_v55 }
  0x36   :  { %1929 = vmatmul.mubr.msk.bf16.gmra.mrb[24].mxu0 %vm85_vm0, %v74_v44 }
  0x37   :  { %1932 = vmatprep.mubr.msk.bf16.mxu0 %vm85_vm0, %v75_v45  ;;  %1949 = vmatpush3.bf16.msra.mxu1 %v2106_v55 }
  0x38   :  { %1950 = vmatprep.subr.bf16.mxu1 %v2107_v56 }
  0x3b   :  { %1951 = vmatpush3.bf16.msra.mxu1 %v2107_v56 }
  0x3e   :  { %1933 = vmatmul.mubr.msk.bf16.gmra.mrb[28].mxu0 %vm85_vm0, %v76_v48 }
  0xd9   :  { %v2395_v57 = vpop.f32.mrb[0].mxu0 }
  0xda   :  { %v2397_v58 = vpop.f32.mrb[1].mxu0  ;;  %v336_v0 = vmul.f32 %v2395_v57, %v2395_v57 }
  0xdb   :  { %v2399_v59 = vpop.f32.mrb[2].mxu0  ;;  %v334_v61 = vmul.f32 %v2397_v58, %v2397_v58 }
  0xdc   :  { %v2401_v60 = vpop.f32.mrb[3].mxu0  ;;  %v337_v3 = vmul.f32 %v2399_v59, %v2399_v59 }
  0xdd   :  { %v295_v62 = vadd.f32 %v2401_v60, %v2397_v58  ;;  %v335_v63 = vmul.f32 %v2401_v60, %v2401_v60 }
  0xdf   :  { %v296_v1 = vadd.f32 %v2395_v57, %v295_v62  ;;  %v366_v2 = vadd.f32 %v335_v63, %v334_v61 }
  0xe1   :  { %v367_v4 = vadd.f32 %v366_v2, %v336_v0  ;;  %v2414_v5 = vpop.f32.mrb[4].mxu0  ;;  %v297_v6 = vadd.f32 %v2399_v59, %v296_v1 }
  0xe2   :  { %v2417_v7 = vpop.f32.mrb[5].mxu0  ;;  %v340_v16 = vmul.f32 %v2414_v5, %v2414_v5 }
  0xe3   :  { %v298_v8 = vadd.f32 %v297_v6, %v2417_v7  ;;  %v338_v9 = vmul.f32 %v2417_v7, %v2417_v7  ;;  %v368_v10 = vadd.f32 %v367_v4, %v337_v3  ;;  %v2422_v11 = vpop.f32.mrb[6].mxu0 }
  0xe4   :  { %v2424_v12 = vpop.f32.mrb[7].mxu0  ;;  %v341_v19 = vmul.f32 %v2422_v11, %v2422_v11 }
  0xe5   :  { %v369_v13 = vadd.f32 %v368_v10, %v338_v9  ;;  %v299_v14 = vadd.f32 %v298_v8, %v2424_v12  ;;  %v339_v15 = vmul.f32 %v2424_v12, %v2424_v12 }
  0xe7   :  { %v300_v17 = vadd.f32 %v2414_v5, %v299_v14  ;;  %v370_v18 = vadd.f32 %v369_v13, %v339_v15 }
  0xe9   :  { %v371_v20 = vadd.f32 %v370_v18, %v340_v16  ;;  %v2434_v21 = vpop.f32.mrb[8].mxu0  ;;  %v301_v22 = vadd.f32 %v2422_v11, %v300_v17 }
  0xea   :  { %v2437_v23 = vpop.f32.mrb[9].mxu0  ;;  %v344_v32 = vmul.f32 %v2434_v21, %v2434_v21 }
  0xeb   :  { %v302_v24 = vadd.f32 %v301_v22, %v2437_v23  ;;  %v342_v25 = vmul.f32 %v2437_v23, %v2437_v23  ;;  %v372_v26 = vadd.f32 %v371_v20, %v341_v19  ;;  %v2442_v27 = vpop.f32.mrb[10].mxu0 }
  0xec   :  { %v2444_v28 = vpop.f32.mrb[11].mxu0  ;;  %v345_v35 = vmul.f32 %v2442_v27, %v2442_v27 }
  0xed   :  { %v373_v29 = vadd.f32 %v372_v26, %v342_v25  ;;  %v303_v30 = vadd.f32 %v302_v24, %v2444_v28  ;;  %v343_v31 = vmul.f32 %v2444_v28, %v2444_v28 }
  0xef   :  { %v304_v33 = vadd.f32 %v2434_v21, %v303_v30  ;;  %v374_v34 = vadd.f32 %v373_v29, %v343_v31 }
  0xf1   :  { %v375_v36 = vadd.f32 %v374_v34, %v344_v32  ;;  %v2454_v37 = vpop.f32.mrb[12].mxu0  ;;  %v305_v38 = vadd.f32 %v2442_v27, %v304_v33 }
  0xf2   :  { %v2457_v39 = vpop.f32.mrb[13].mxu0  ;;  %v348_v48 = vmul.f32 %v2454_v37, %v2454_v37 }
  0xf3   :  { %v306_v40 = vadd.f32 %v305_v38, %v2457_v39  ;;  %v346_v41 = vmul.f32 %v2457_v39, %v2457_v39  ;;  %v376_v42 = vadd.f32 %v375_v36, %v345_v35  ;;  %v2462_v43 = vpop.f32.mrb[14].mxu0 }
  0xf4   :  { %v2464_v44 = vpop.f32.mrb[15].mxu0  ;;  %v349_v51 = vmul.f32 %v2462_v43, %v2462_v43 }
  0xf5   :  { %v377_v45 = vadd.f32 %v376_v42, %v346_v41  ;;  %v307_v46 = vadd.f32 %v306_v40, %v2464_v44  ;;  %v347_v47 = vmul.f32 %v2464_v44, %v2464_v44 }
  0xf7   :  { %v308_v49 = vadd.f32 %v2454_v37, %v307_v46  ;;  %v378_v50 = vadd.f32 %v377_v45, %v347_v47 }
  0xf9   :  { %v379_v52 = vadd.f32 %v378_v50, %v348_v48  ;;  %v2474_v53 = vpop.f32.mrb[16].mxu0  ;;  %v309_v54 = vadd.f32 %v2462_v43, %v308_v49 }
  0xfa   :  { %v2477_v55 = vpop.f32.mrb[17].mxu0  ;;  %v352_v4 = vmul.f32 %v2474_v53, %v2474_v53 }
  0xfb   :  { %v310_v56 = vadd.f32 %v309_v54, %v2477_v55  ;;  %v350_v61 = vmul.f32 %v2477_v55, %v2477_v55  ;;  %v380_v62 = vadd.f32 %v379_v52, %v349_v51  ;;  %v2482_v63 = vpop.f32.mrb[18].mxu0 }
  0xfc   :  { %v2484_v0 = vpop.f32.mrb[19].mxu0  ;;  %v353_v9 = vmul.f32 %v2482_v63, %v2482_v63 }
  0xfd   :  { %v381_v1 = vadd.f32 %v380_v62, %v350_v61  ;;  %v311_v2 = vadd.f32 %v310_v56, %v2484_v0  ;;  %v351_v3 = vmul.f32 %v2484_v0, %v2484_v0 }
  0xff   :  { %v312_v6 = vadd.f32 %v2474_v53, %v311_v2  ;;  %v382_v8 = vadd.f32 %v381_v1, %v351_v3 }
 0x101   :  { %v383_v10 = vadd.f32 %v382_v8, %v352_v4  ;;  %v2494_v13 = vpop.f32.mrb[20].mxu0  ;;  %v313_v14 = vadd.f32 %v2482_v63, %v312_v6 }
 0x102   :  { %v2497_v15 = vpop.f32.mrb[21].mxu0  ;;  %v356_v26 = vmul.f32 %v2494_v13, %v2494_v13 }
 0x103   :  { %v314_v16 = vadd.f32 %v313_v14, %v2497_v15  ;;  %v354_v17 = vmul.f32 %v2497_v15, %v2497_v15  ;;  %v384_v18 = vadd.f32 %v383_v10, %v353_v9  ;;  %v2502_v19 = vpop.f32.mrb[22].mxu0 }
 0x104   :  { %v2504_v20 = vpop.f32.mrb[23].mxu0  ;;  %v357_v31 = vmul.f32 %v2502_v19, %v2502_v19 }
 0x105   :  { %v385_v22 = vadd.f32 %v384_v18, %v354_v17  ;;  %v315_v24 = vadd.f32 %v314_v16, %v2504_v20  ;;  %v355_v25 = vmul.f32 %v2504_v20, %v2504_v20 }
 0x107   :  { %v316_v29 = vadd.f32 %v2494_v13, %v315_v24  ;;  %v386_v30 = vadd.f32 %v385_v22, %v355_v25 }
 0x109   :  { %v387_v32 = vadd.f32 %v386_v30, %v356_v26  ;;  %v2514_v33 = vpop.f32.mrb[24].mxu0  ;;  %v317_v34 = vadd.f32 %v2502_v19, %v316_v29 }
 0x10a   :  { %v2517_v35 = vpop.f32.mrb[25].mxu0  ;;  %v360_v48 = vmul.f32 %v2514_v33, %v2514_v33 }
 0x10b   :  { %v318_v36 = vadd.f32 %v317_v34, %v2517_v35  ;;  %v358_v38 = vmul.f32 %v2517_v35, %v2517_v35  ;;  %v388_v40 = vadd.f32 %v387_v32, %v357_v31  ;;  %v2522_v41 = vpop.f32.mrb[26].mxu0 }
 0x10c   :  { %v2524_v42 = vpop.f32.mrb[27].mxu0  ;;  %v361_v51 = vmul.f32 %v2522_v41, %v2522_v41 }
 0x10d   :  { %v389_v45 = vadd.f32 %v388_v40, %v358_v38  ;;  %v319_v46 = vadd.f32 %v318_v36, %v2524_v42  ;;  %v359_v47 = vmul.f32 %v2524_v42, %v2524_v42 }
 0x10f   :  { %v320_v49 = vadd.f32 %v2514_v33, %v319_v46  ;;  %v390_v50 = vadd.f32 %v389_v45, %v359_v47 }
 0x111   :  { %v391_v52 = vadd.f32 %v390_v50, %v360_v48  ;;  %v2534_v54 = vpop.f32.mrb[28].mxu0  ;;  %v321_v56 = vadd.f32 %v2522_v41, %v320_v49 }
 0x112   :  { %v2537_v61 = vpop.f32.mrb[29].mxu0  ;;  %v364_v10 = vmul.f32 %v2534_v54, %v2534_v54 }
 0x113   :  { %v322_v62 = vadd.f32 %v321_v56, %v2537_v61  ;;  %v362_v1 = vmul.f32 %v2537_v61, %v2537_v61  ;;  %v392_v2 = vadd.f32 %v391_v52, %v361_v51  ;;  %v2542_v3 = vpop.f32.mrb[30].mxu0  ;;  %v415_v56 = vlaneseq }
 0x114   :  { %v283_v4 = vpop.f32.mrb[31].mxu0  ;;  %v365_v17 = vmul.f32 %v2542_v3, %v2542_v3 }
 0x115   :  { %v393_v6 = vadd.f32 %v392_v2, %v362_v1  ;;  %v323_v8 = vadd.f32 %v322_v62, %v283_v4  ;;  %v363_v9 = vmul.f32 %v283_v4, %v283_v4  ;;  %v2550_v62 = vshrl.u32 %v415_v56, 7  ;;  %v25_v1 = vld [vmem:[%s3094_s5] sm:$0x7] }
 0x117   :  { %v324_v14 = vadd.f32 %v2534_v54, %v323_v8  ;;  %v394_v16 = vadd.f32 %v393_v6, %v363_v9  ;;  %v2556_v2 = vsub.s32 1, %v2550_v62 }
 0x119   :  { %v325_v18 = vadd.f32 %v2542_v3, %v324_v14  ;;  %v395_v22 = vadd.f32 %v394_v16, %v364_v10  ;;  %v2560_v14 = vsub.s32 2, %v2550_v62 }
 0x11b   :  { %v326_v24 = vrot.slane %v325_v18, 4  ;;  %v396_v25 = vadd.f32 %v395_v22, %v365_v17 }
 0x11d   :  { %v327_v26 = vadd.f32 %v326_v24, %v325_v18  ;;  %v397_v29 = vrot.slane %v396_v25, 4 }
 0x11f   :  { %v328_v30 = vrot.slane %v327_v26, 2  ;;  %v398_v31 = vadd.f32 %v397_v29, %v396_v25 }
 0x121   :  { %v329_v32 = vadd.f32 %v328_v30, %v327_v26  ;;  %v399_v34 = vrot.slane %v398_v31, 2 }
 0x123   :  { %v330_v36 = vrot.slane %v329_v32, 1  ;;  %v400_v38 = vadd.f32 %v399_v34, %v398_v31 }
 0x125   :  { %v331_v40 = vadd.f32 %v330_v36, %v329_v32  ;;  %v401_v45 = vrot.slane %v400_v38, 1 }
 0x127   :  { %v333_v46 = vmul.f32 0.00390625, %v331_v40  ;;  %v402_v47 = vadd.f32 %v401_v45, %v400_v38 }
 0x129   :  { %v403_v48 = vmul.f32 0.00390625, %v402_v47  ;;  %v404_v49 = vmul.f32 %v333_v46, %v333_v46 }
 0x12b   :  { %v405_v50 = vsub.f32 %v403_v48, %v404_v49 }
 0x12d   :  { %v406_v51 = vmax.f32 %v405_v50, 0.0 }
 0x12f   :  { %v407_v52 = vadd.f32 1e-05, %v406_v51 }
 0x131   :  { %2124 = vrsqrt.f32 %v407_v52 }
 0x13b   :  { %v2125_v6 = vpop.eup %2124 }
 0x13c   :  { %v409_v8 = vmul.f32 %v2125_v6, %v25_v1 }
 0x13e   :  { %v410_v9 = vmul.f32 %v409_v8, %v333_v46  ;;  %v418_v10 = vrot.slane %v409_v8, %v2556_v2 }
 0x140   :  { %v412_v16 = vrot.slane %v410_v9, 7  ;;  %v448_v17 = vmul.f32 %v418_v10, %v283_v4  ;;  %v2563_v18 = vmul.f32 %v418_v10, %v2397_v58  ;;  %v2566_v22 = vmul.f32 %v418_v10, %v2401_v60 }
 0x141   :  { %v421_v24 = vmul.f32 %v2395_v57, %v418_v10  ;;  %v422_v25 = vmul.f32 %v2399_v59, %v418_v10  ;;  %v423_v26 = vmul.f32 %v418_v10, %v2417_v7  ;;  %v424_v29 = vmul.f32 %v418_v10, %v2424_v12 }
 0x142   :  { %v414_v30 = vsub.f32 %v25_v1, %v412_v16  ;;  %v425_v31 = vmul.f32 %v2414_v5, %v418_v10  ;;  %v426_v32 = vmul.f32 %v2422_v11, %v418_v10  ;;  %v427_v4 = vmul.f32 %v418_v10, %v2437_v23 }
 0x143   :  { %v428_v58 = vmul.f32 %v418_v10, %v2444_v28  ;;  %v429_v60 = vmul.f32 %v2434_v21, %v418_v10  ;;  %v430_v34 = vmul.f32 %v2442_v27, %v418_v10  ;;  %v431_v57 = vmul.f32 %v418_v10, %v2457_v39 }
 0x144   :  { %v454_v59 = vrot.slane %v414_v30, %v2560_v14  ;;  %v432_v7 = vmul.f32 %v418_v10, %v2464_v44  ;;  %v433_v12 = vmul.f32 %v2454_v37, %v418_v10  ;;  %v434_v5 = vmul.f32 %v2462_v43, %v418_v10 }
 0x145   :  { %v435_v11 = vmul.f32 %v418_v10, %v2477_v55  ;;  %v436_v23 = vmul.f32 %v418_v10, %v2484_v0  ;;  %v437_v28 = vmul.f32 %v2474_v53, %v418_v10  ;;  %v438_v21 = vmul.f32 %v2482_v63, %v418_v10 }
 0x146   :  { %v2587_v36 = vadd.f32 %v454_v59, %v448_v17  ;;  %v439_v27 = vmul.f32 %v418_v10, %v2497_v15  ;;  %v440_v39 = vmul.f32 %v418_v10, %v2504_v20  ;;  %v441_v44 = vmul.f32 %v2494_v13, %v418_v10 }
 0x147   :  { %v442_v37 = vmul.f32 %v2502_v19, %v418_v10  ;;  %v443_v43 = vmul.f32 %v418_v10, %v2517_v35  ;;  %v444_v55 = vmul.f32 %v418_v10, %v2524_v42  ;;  %v445_v0 = vmul.f32 %v2514_v33, %v418_v10 }
 0x148   :  { %v446_v53 = vmul.f32 %v2522_v41, %v418_v10  ;;  %v447_v63 = vmul.f32 %v418_v10, %v2537_v61  ;;  %v449_v38 = vmul.f32 %v2534_v54, %v418_v10  ;;  %v450_v15 = vmul.f32 %v2542_v3, %v418_v10 }
 0x149   :  { %v457_v40 = vadd.f32 %v454_v59, %v421_v24  ;;  %v458_v20 = vadd.f32 %v454_v59, %v422_v25  ;;  %v459_v45 = vadd.f32 %v454_v59, %v423_v26  ;;  %v460_v13 = vadd.f32 %v454_v59, %v424_v29 }
 0x14a   :  { %v461_v46 = vadd.f32 %v454_v59, %v425_v31  ;;  %v462_v19 = vadd.f32 %v454_v59, %v426_v32  ;;  %v463_v47 = vadd.f32 %v454_v59, %v427_v4  ;;  %v464_v35 = vadd.f32 %v454_v59, %v428_v58 }
 0x14b   :  { %v465_v48 = vadd.f32 %v454_v59, %v429_v60  ;;  %v466_v42 = vadd.f32 %v454_v59, %v430_v34  ;;  %v467_v49 = vadd.f32 %v454_v59, %v431_v57  ;;  %v468_v33 = vadd.f32 %v454_v59, %v432_v7 }
 0x14c   :  { %v469_v50 = vadd.f32 %v454_v59, %v433_v12  ;;  %v470_v41 = vadd.f32 %v454_v59, %v434_v5  ;;  %v471_v51 = vadd.f32 %v454_v59, %v435_v11  ;;  %v472_v61 = vadd.f32 %v454_v59, %v436_v23 }
 0x14d   :  { %v473_v52 = vadd.f32 %v454_v59, %v437_v28  ;;  %v474_v54 = vadd.f32 %v454_v59, %v438_v21  ;;  %v475_v56 = vadd.f32 %v454_v59, %v439_v27  ;;  %v476_v3 = vadd.f32 %v454_v59, %v440_v39 }
 0x14e   :  { %v477_v1 = vadd.f32 %v454_v59, %v441_v44  ;;  %v478_v6 = vadd.f32 %v454_v59, %v442_v37  ;;  %v479_v8 = vadd.f32 %v454_v59, %v443_v43  ;;  %v480_v9 = vadd.f32 %v454_v59, %v444_v55 }
 0x14f   :  { %v481_v10 = vadd.f32 %v454_v59, %v445_v0  ;;  %v482_v16 = vadd.f32 %v454_v59, %v446_v53  ;;  %v483_v17 = vadd.f32 %v454_v59, %v447_v63  ;;  %v485_v24 = vadd.f32 %v454_v59, %v449_v38 }
 0x150   :  { %v486_v25 = vadd.f32 %v454_v59, %v450_v15  ;;  %v455_v26 = vadd.f32 %v454_v59, %v2563_v18  ;;  %v456_v29 = vadd.f32 %v454_v59, %v2566_v22  ;;  %v489_v30 = vmax.f32 %v457_v40, 0.0 }
 0x151   :  { %v490_v31 = vmax.f32 %v458_v20, 0.0  ;;  %v491_v32 = vmax.f32 %v459_v45, 0.0  ;;  %v492_v4 = vmax.f32 %v460_v13, 0.0  ;;  %v493_v58 = vmax.f32 %v461_v46, 0.0 }
 0x152   :  { %v487_v60 = vmax.f32 %v455_v26, 0.0  ;;  %v488_v34 = vmax.f32 %v456_v29, 0.0  ;;  %v494_v57 = vmax.f32 %v462_v19, 0.0  ;;  %v495_v7 = vmax.f32 %v463_v47, 0.0 }
 0x153   :  { %v520_v12 = vpack.c.bf16 %v490_v31, %v489_v30  ;;  %v521_v5 = vpack.c.bf16 %v492_v4, %v491_v32  ;;  %v496_v11 = vmax.f32 %v464_v35, 0.0  ;;  %v497_v23 = vmax.f32 %v465_v48, 0.0 }
 0x154   :  { %v519_v28 = vpack.c.bf16 %v488_v34, %v487_v60  ;;  %v522_v21 = vpack.c.bf16 %v494_v57, %v493_v58  ;;  %v498_v27 = vmax.f32 %v466_v42, 0.0  ;;  %v499_v39 = vmax.f32 %v467_v49, 0.0 }
 0x155   :  { %v523_v18 = vpack.c.bf16 %v496_v11, %v495_v7  ;;  %v500_v44 = vmax.f32 %v468_v33, 0.0  ;;  %v501_v22 = vmax.f32 %v469_v50, 0.0  ;;  %v502_v59 = vmax.f32 %v470_v41, 0.0 }
 0x156   :  { %1952 = vmatprep.mubr.bf16.mxu1 %v519_v28  ;;  %v524_v37 = vpack.c.bf16 %v498_v27, %v497_v23  ;;  %v503_v43 = vmax.f32 %v471_v51, 0.0  ;;  %v504_v55 = vmax.f32 %v472_v61, 0.0  ;;  %v505_v0 = vmax.f32 %v473_v52, 0.0 }
 0x157   :  { %1953 = vmatmul.mubr.bf16.vlgmr.msra.gmra.mrb[0].mxu1 %v520_v12  ;;  %v525_v53 = vpack.c.bf16 %v500_v44, %v499_v39  ;;  %v526_v63 = vpack.c.bf16 %v502_v59, %v501_v22  ;;  %v506_v38 = vmax.f32 %v474_v54, 0.0  ;;  %v507_v15 = vmax.f32 %v475_v56, 0.0 }
 0x158   :  { %1956 = vmatprep.mubr.bf16.mxu1 %v521_v5  ;;  %v527_v40 = vpack.c.bf16 %v504_v55, %v503_v43  ;;  %v508_v20 = vmax.f32 %v476_v3, 0.0  ;;  %v509_v45 = vmax.f32 %v477_v1, 0.0  ;;  %v510_v13 = vmax.f32 %v478_v6, 0.0  ;;  %v2109_v3 = vld [vmem:[%s3092_s3 + $0x8] sm:$0xff]   ;;  %v2110_v1 = vld [vmem:[%s3092_s3 + $0x10] sm:$0xff]   ;;  %v2111_v6 = vld [vmem:[%s3092_s3 + $0x18] sm:$0xff]  }
 0x159   :  { %v528_v46 = vpack.c.bf16 %v506_v38, %v505_v0  ;;  %v511_v19 = vmax.f32 %v479_v8, 0.0  ;;  %v512_v47 = vmax.f32 %v480_v9, 0.0  ;;  %v513_v35 = vmax.f32 %v481_v10, 0.0  ;;  %v2112_v8 = vld [vmem:[%s3092_s3 + $0x20] sm:$0xff]   ;;  %v2113_v9 = vld [vmem:[%s3092_s3 + $0x28] sm:$0xff]   ;;  %v2114_v10 = vld [vmem:[%s3092_s3 + $0x30] sm:$0xff]  }
 0x15a   :  { %v529_v48 = vpack.c.bf16 %v508_v20, %v507_v15  ;;  %v530_v42 = vpack.c.bf16 %v510_v13, %v509_v45  ;;  %v514_v49 = vmax.f32 %v482_v16, 0.0  ;;  %v515_v33 = vmax.f32 %v483_v17, 0.0  ;;  %v2115_v16 = vld [vmem:[%s3092_s3 + $0x38] sm:$0xff]  }
 0x15b   :  { %v531_v50 = vpack.c.bf16 %v512_v47, %v511_v19  ;;  %v516_v41 = vmax.f32 %v2587_v36, 0.0  ;;  %v517_v51 = vmax.f32 %v485_v24, 0.0  ;;  %v518_v61 = vmax.f32 %v486_v25, 0.0  ;;  %v2108_v36 = vld [vmem:[%s3092_s3] sm:$0xff]  }
 0x15c   :  { %v532_v52 = vpack.c.bf16 %v514_v49, %v513_v35  ;;  %1984 = vmatprep.subr.bf16.mxu0 %v2108_v36 }
 0x15d   :  { %v533_v54 = vpack.c.bf16 %v516_v41, %v515_v33  ;;  %v534_v56 = vpack.c.bf16 %v518_v61, %v517_v51  ;;  %1985 = vmatpush3.bf16.msra.mxu0 %v2108_v36 }
 0x15e   :  { %1986 = vmatprep.subr.bf16.mxu0 %v2109_v3 }
 0x15f   :  { %1957 = vmatmul.mubr.bf16.gmra.mrb[4].mxu1 %v522_v21 }
 0x160   :  { %1960 = vmatprep.mubr.bf16.mxu1 %v523_v18 }
 0x161   :  { %1987 = vmatpush3.bf16.msra.mxu0 %v2109_v3 }
 0x162   :  { %1988 = vmatprep.subr.bf16.mxu0 %v2110_v1 }
 0x165   :  { %1989 = vmatpush3.bf16.msra.mxu0 %v2110_v1 }
 0x166   :  { %1990 = vmatprep.subr.bf16.mxu0 %v2111_v6 }
 0x167   :  { %1961 = vmatmul.mubr.bf16.gmra.mrb[8].mxu1 %v524_v37 }
 0x168   :  { %1964 = vmatprep.mubr.bf16.mxu1 %v525_v53 }
 0x169   :  { %1991 = vmatpush3.bf16.msra.mxu0 %v2111_v6 }
 0x16a   :  { %1992 = vmatprep.subr.bf16.mxu0 %v2112_v8 }
 0x16d   :  { %1993 = vmatpush3.bf16.msra.mxu0 %v2112_v8 }
 0x16e   :  { %1994 = vmatprep.subr.bf16.mxu0 %v2113_v9 }
 0x16f   :  { %1965 = vmatmul.mubr.bf16.gmra.mrb[12].mxu1 %v526_v63 }
 0x170   :  { %1968 = vmatprep.mubr.bf16.mxu1 %v527_v40 }
 0x171   :  { %1995 = vmatpush3.bf16.msra.mxu0 %v2113_v9 }
 0x172   :  { %1996 = vmatprep.subr.bf16.mxu0 %v2114_v10 }
 0x175   :  { %1997 = vmatpush3.bf16.msra.mxu0 %v2114_v10 }
 0x176   :  { %1998 = vmatprep.subr.bf16.mxu0 %v2115_v16 }
 0x177   :  { %1969 = vmatmul.mubr.bf16.gmra.mrb[16].mxu1 %v528_v46 }
 0x178   :  { %1972 = vmatprep.mubr.bf16.mxu1 %v529_v48 }
 0x179   :  { %1999 = vmatpush3.bf16.msra.mxu0 %v2115_v16 }
 0x17f   :  { %1973 = vmatmul.mubr.bf16.gmra.mrb[20].mxu1 %v530_v42 }
 0x180   :  { %1976 = vmatprep.mubr.bf16.mxu1 %v531_v50 }
 0x187   :  { %1977 = vmatmul.mubr.bf16.gmra.mrb[24].mxu1 %v532_v52 }
 0x188   :  { %1980 = vmatprep.mubr.bf16.mxu1 %v533_v54 }
 0x18f   :  { %1981 = vmatmul.mubr.bf16.gmra.mrb[28].mxu1 %v534_v56 }
 0x22a   :  { %v2627_v17 = vpop.f32.mrb[0].mxu1 }
 0x22b   :  { %v2629_v24 = vpop.f32.mrb[1].mxu1  ;;  %v800_v32 = vmul.f32 %v2627_v17, %v2627_v17 }
 0x22c   :  { %v2631_v25 = vpop.f32.mrb[2].mxu1  ;;  %v798_v29 = vmul.f32 %v2629_v24, %v2629_v24 }
 0x22d   :  { %v2633_v26 = vpop.f32.mrb[3].mxu1  ;;  %v801_v60 = vmul.f32 %v2631_v25, %v2631_v25 }
 0x22e   :  { %v760_v30 = vadd.f32 %v2633_v26, %v2629_v24  ;;  %v799_v31 = vmul.f32 %v2633_v26, %v2633_v26 }
 0x230   :  { %v761_v4 = vadd.f32 %v2627_v17, %v760_v30  ;;  %v830_v58 = vadd.f32 %v799_v31, %v798_v29 }
 0x232   :  { %v831_v34 = vadd.f32 %v830_v58, %v800_v32  ;;  %v2646_v57 = vpop.f32.mrb[4].mxu1  ;;  %v762_v7 = vadd.f32 %v2631_v25, %v761_v4 }
 0x233   :  { %v2649_v12 = vpop.f32.mrb[5].mxu1  ;;  %v804_v44 = vmul.f32 %v2646_v57, %v2646_v57 }
 0x234   :  { %v763_v5 = vadd.f32 %v762_v7, %v2649_v12  ;;  %v802_v11 = vmul.f32 %v2649_v12, %v2649_v12  ;;  %v832_v23 = vadd.f32 %v831_v34, %v801_v60  ;;  %v2654_v28 = vpop.f32.mrb[6].mxu1 }
 0x235   :  { %v2656_v21 = vpop.f32.mrb[7].mxu1  ;;  %v805_v37 = vmul.f32 %v2654_v28, %v2654_v28 }
 0x236   :  { %v833_v27 = vadd.f32 %v832_v23, %v802_v11  ;;  %v764_v39 = vadd.f32 %v763_v5, %v2656_v21  ;;  %v803_v18 = vmul.f32 %v2656_v21, %v2656_v21 }
 0x238   :  { %v765_v22 = vadd.f32 %v2646_v57, %v764_v39  ;;  %v834_v59 = vadd.f32 %v833_v27, %v803_v18 }
 0x23a   :  { %v835_v43 = vadd.f32 %v834_v59, %v804_v44  ;;  %v2666_v55 = vpop.f32.mrb[8].mxu1  ;;  %v766_v0 = vadd.f32 %v2654_v28, %v765_v22 }
 0x23b   :  { %v2669_v53 = vpop.f32.mrb[9].mxu1  ;;  %v808_v19 = vmul.f32 %v2666_v55, %v2666_v55 }
 0x23c   :  { %v767_v63 = vadd.f32 %v766_v0, %v2669_v53  ;;  %v806_v38 = vmul.f32 %v2669_v53, %v2669_v53  ;;  %v836_v15 = vadd.f32 %v835_v43, %v805_v37  ;;  %v2674_v40 = vpop.f32.mrb[10].mxu1 }
 0x23d   :  { %v2676_v20 = vpop.f32.mrb[11].mxu1  ;;  %v809_v48 = vmul.f32 %v2674_v40, %v2674_v40 }
 0x23e   :  { %v837_v45 = vadd.f32 %v836_v15, %v806_v38  ;;  %v768_v13 = vadd.f32 %v767_v63, %v2676_v20  ;;  %v807_v46 = vmul.f32 %v2676_v20, %v2676_v20 }
 0x240   :  { %v769_v47 = vadd.f32 %v2666_v55, %v768_v13  ;;  %v838_v35 = vadd.f32 %v837_v45, %v807_v46 }
 0x242   :  { %v839_v42 = vadd.f32 %v838_v35, %v808_v19  ;;  %v2686_v49 = vpop.f32.mrb[12].mxu1  ;;  %v770_v33 = vadd.f32 %v2674_v40, %v769_v47 }
 0x243   :  { %v2689_v50 = vpop.f32.mrb[13].mxu1  ;;  %v812_v1 = vmul.f32 %v2686_v49, %v2686_v49 }
 0x244   :  { %v771_v41 = vadd.f32 %v770_v33, %v2689_v50  ;;  %v810_v51 = vmul.f32 %v2689_v50, %v2689_v50  ;;  %v840_v61 = vadd.f32 %v839_v42, %v809_v48  ;;  %v2694_v52 = vpop.f32.mrb[14].mxu1 }
 0x245   :  { %v2696_v54 = vpop.f32.mrb[15].mxu1  ;;  %v813_v9 = vmul.f32 %v2694_v52, %v2694_v52 }
 0x246   :  { %v841_v56 = vadd.f32 %v840_v61, %v810_v51  ;;  %v772_v36 = vadd.f32 %v771_v41, %v2696_v54  ;;  %v811_v3 = vmul.f32 %v2696_v54, %v2696_v54 }
 0x248   :  { %v773_v6 = vadd.f32 %v2686_v49, %v772_v36  ;;  %v842_v8 = vadd.f32 %v841_v56, %v811_v3 }
 0x24a   :  { %v843_v10 = vadd.f32 %v842_v8, %v812_v1  ;;  %v2706_v16 = vpop.f32.mrb[16].mxu1  ;;  %v774_v29 = vadd.f32 %v2694_v52, %v773_v6 }
 0x24b   :  { %v2709_v30 = vpop.f32.mrb[17].mxu1  ;;  %v816_v11 = vmul.f32 %v2706_v16, %v2706_v16 }
 0x24c   :  { %v775_v31 = vadd.f32 %v774_v29, %v2709_v30  ;;  %v814_v32 = vmul.f32 %v2709_v30, %v2709_v30  ;;  %v844_v4 = vadd.f32 %v843_v10, %v813_v9  ;;  %v2714_v58 = vpop.f32.mrb[18].mxu1 }
 0x24d   :  { %v2716_v60 = vpop.f32.mrb[19].mxu1  ;;  %v817_v39 = vmul.f32 %v2714_v58, %v2714_v58 }
 0x24e   :  { %v845_v34 = vadd.f32 %v844_v4, %v814_v32  ;;  %v776_v7 = vadd.f32 %v775_v31, %v2716_v60  ;;  %v815_v5 = vmul.f32 %v2716_v60, %v2716_v60 }
 0x250   :  { %v777_v23 = vadd.f32 %v2706_v16, %v776_v7  ;;  %v846_v27 = vadd.f32 %v845_v34, %v815_v5 }
 0x252   :  { %v847_v18 = vadd.f32 %v846_v27, %v816_v11  ;;  %v2726_v44 = vpop.f32.mrb[20].mxu1  ;;  %v778_v22 = vadd.f32 %v2714_v58, %v777_v23 }
 0x253   :  { %v2729_v59 = vpop.f32.mrb[21].mxu1  ;;  %v820_v46 = vmul.f32 %v2726_v44, %v2726_v44 }
 0x254   :  { %v779_v37 = vadd.f32 %v778_v22, %v2729_v59  ;;  %v818_v43 = vmul.f32 %v2729_v59, %v2729_v59  ;;  %v848_v0 = vadd.f32 %v847_v18, %v817_v39  ;;  %v2734_v63 = vpop.f32.mrb[22].mxu1 }
 0x255   :  { %v2736_v38 = vpop.f32.mrb[23].mxu1  ;;  %v821_v35 = vmul.f32 %v2734_v63, %v2734_v63 }
 0x256   :  { %v849_v15 = vadd.f32 %v848_v0, %v818_v43  ;;  %v780_v45 = vadd.f32 %v779_v37, %v2736_v38  ;;  %v819_v13 = vmul.f32 %v2736_v38, %v2736_v38 }
 0x258   :  { %v781_v19 = vadd.f32 %v2726_v44, %v780_v45  ;;  %v850_v47 = vadd.f32 %v849_v15, %v819_v13 }
 0x25a   :  { %v851_v48 = vadd.f32 %v850_v47, %v820_v46  ;;  %v2746_v42 = vpop.f32.mrb[24].mxu1  ;;  %v782_v33 = vadd.f32 %v2734_v63, %v781_v19 }
 0x25b   :  { %v2749_v41 = vpop.f32.mrb[25].mxu1  ;;  %v824_v9 = vmul.f32 %v2746_v42, %v2746_v42 }
 0x25c   :  { %v783_v51 = vadd.f32 %v782_v33, %v2749_v41  ;;  %v822_v61 = vmul.f32 %v2749_v41, %v2749_v41  ;;  %v852_v56 = vadd.f32 %v851_v48, %v821_v35  ;;  %v2754_v36 = vpop.f32.mrb[26].mxu1 }
 0x25d   :  { %v2756_v3 = vpop.f32.mrb[27].mxu1  ;;  %v825_v31 = vmul.f32 %v2754_v36, %v2754_v36 }
 0x25e   :  { %v853_v1 = vadd.f32 %v852_v56, %v822_v61  ;;  %v784_v6 = vadd.f32 %v783_v51, %v2756_v3  ;;  %v823_v8 = vmul.f32 %v2756_v3, %v2756_v3 }
 0x260   :  { %v785_v10 = vadd.f32 %v2746_v42, %v784_v6  ;;  %v854_v29 = vadd.f32 %v853_v1, %v823_v8 }
 0x262   :  { %v855_v32 = vadd.f32 %v854_v29, %v824_v9  ;;  %v2766_v4 = vpop.f32.mrb[28].mxu1  ;;  %v786_v34 = vadd.f32 %v2754_v36, %v785_v10 }
 0x263   :  { %v2769_v7 = vpop.f32.mrb[29].mxu1  ;;  %v828_v43 = vmul.f32 %v2766_v4, %v2766_v4 }
 0x264   :  { %v787_v5 = vadd.f32 %v786_v34, %v2769_v7  ;;  %v826_v11 = vmul.f32 %v2769_v7, %v2769_v7  ;;  %v856_v23 = vadd.f32 %v855_v32, %v825_v31  ;;  %v2774_v27 = vpop.f32.mrb[30].mxu1 }
 0x265   :  { %v748_v39 = vpop.f32.mrb[31].mxu1  ;;  %v829_v45 = vmul.f32 %v2774_v27, %v2774_v27 }
 0x266   :  { %v857_v18 = vadd.f32 %v856_v23, %v826_v11  ;;  %v788_v22 = vadd.f32 %v787_v5, %v748_v39  ;;  %v827_v37 = vmul.f32 %v748_v39, %v748_v39  ;;  %v26_v23 = vld [vmem:[%s3094_s5 + $0x4] sm:$0x7] }
 0x268   :  { %v789_v0 = vadd.f32 %v2766_v4, %v788_v22  ;;  %v858_v15 = vadd.f32 %v857_v18, %v827_v37 }
 0x26a   :  { %v790_v13 = vadd.f32 %v2774_v27, %v789_v0  ;;  %v859_v46 = vadd.f32 %v858_v15, %v828_v43 }
 0x26c   :  { %v791_v19 = vrot.slane %v790_v13, 4  ;;  %v860_v47 = vadd.f32 %v859_v46, %v829_v45 }
 0x26e   :  { %v792_v35 = vadd.f32 %v791_v19, %v790_v13  ;;  %v861_v48 = vrot.slane %v860_v47, 4 }
 0x270   :  { %v793_v33 = vrot.slane %v792_v35, 2  ;;  %v862_v51 = vadd.f32 %v861_v48, %v860_v47 }
 0x272   :  { %v794_v61 = vadd.f32 %v793_v33, %v792_v35  ;;  %v863_v56 = vrot.slane %v862_v51, 2 }
 0x274   :  { %v795_v1 = vrot.slane %v794_v61, 1  ;;  %v864_v6 = vadd.f32 %v863_v56, %v862_v51 }
 0x276   :  { %v796_v8 = vadd.f32 %v795_v1, %v794_v61  ;;  %v865_v9 = vrot.slane %v864_v6, 1 }
 0x278   :  { %v797_v10 = vmul.f32 0.00390625, %v796_v8  ;;  %v866_v29 = vadd.f32 %v865_v9, %v864_v6 }
 0x27a   :  { %v867_v31 = vmul.f32 0.00390625, %v866_v29  ;;  %v868_v32 = vmul.f32 %v797_v10, %v797_v10 }
 0x27c   :  { %v869_v34 = vsub.f32 %v867_v31, %v868_v32 }
 0x27e   :  { %v870_v5 = vmax.f32 %v869_v34, 0.0 }
 0x280   :  { %v871_v11 = vadd.f32 1e-05, %v870_v5 }
 0x282   :  { %2126 = vrsqrt.f32 %v871_v11 }
 0x28c   :  { %v2127_v18 = vpop.eup %2126 }
 0x28d   :  { %v873_v22 = vmul.f32 %v2127_v18, %v26_v23 }
 0x28f   :  { %v874_v37 = vmul.f32 %v873_v22, %v797_v10  ;;  %v882_v43 = vrot.slane %v873_v22, %v2556_v2 }
 0x291   :  { %v876_v0 = vrot.slane %v874_v37, 7  ;;  %v912_v15 = vmul.f32 %v882_v43, %v748_v39  ;;  %v883_v45 = vmul.f32 %v882_v43, %v2629_v24  ;;  %v884_v13 = vmul.f32 %v882_v43, %v2633_v26 }
 0x292   :  { %v885_v46 = vmul.f32 %v2627_v17, %v882_v43  ;;  %v886_v19 = vmul.f32 %v2631_v25, %v882_v43  ;;  %v887_v47 = vmul.f32 %v882_v43, %v2649_v12  ;;  %v888_v35 = vmul.f32 %v882_v43, %v2656_v21 }
 0x293   :  { %v878_v48 = vsub.f32 %v26_v23, %v876_v0  ;;  %v889_v33 = vmul.f32 %v2646_v57, %v882_v43  ;;  %v890_v51 = vmul.f32 %v2654_v28, %v882_v43  ;;  %v891_v61 = vmul.f32 %v882_v43, %v2669_v53 }
 0x294   :  { %v892_v39 = vmul.f32 %v882_v43, %v2676_v20  ;;  %v893_v24 = vmul.f32 %v2666_v55, %v882_v43  ;;  %v894_v26 = vmul.f32 %v2674_v40, %v882_v43  ;;  %v895_v17 = vmul.f32 %v882_v43, %v2689_v50 }
 0x295   :  { %v918_v25 = vrot.slane %v878_v48, %v2560_v14  ;;  %v896_v12 = vmul.f32 %v882_v43, %v2696_v54  ;;  %v897_v21 = vmul.f32 %v2686_v49, %v882_v43  ;;  %v898_v57 = vmul.f32 %v2694_v52, %v882_v43 }
 0x296   :  { %v899_v28 = vmul.f32 %v882_v43, %v2709_v30  ;;  %v900_v53 = vmul.f32 %v882_v43, %v2716_v60  ;;  %v901_v20 = vmul.f32 %v2706_v16, %v882_v43  ;;  %v902_v55 = vmul.f32 %v2714_v58, %v882_v43 }
 0x297   :  { %v2807_v56 = vadd.f32 %v918_v25, %v912_v15  ;;  %v903_v40 = vmul.f32 %v882_v43, %v2729_v59  ;;  %v904_v50 = vmul.f32 %v882_v43, %v2736_v38  ;;  %v905_v54 = vmul.f32 %v2726_v44, %v882_v43 }
 0x298   :  { %v906_v49 = vmul.f32 %v2734_v63, %v882_v43  ;;  %v907_v52 = vmul.f32 %v882_v43, %v2749_v41  ;;  %v908_v30 = vmul.f32 %v882_v43, %v2756_v3  ;;  %v909_v60 = vmul.f32 %v2746_v42, %v882_v43 }
 0x299   :  { %v910_v16 = vmul.f32 %v2754_v36, %v882_v43  ;;  %v911_v58 = vmul.f32 %v882_v43, %v2769_v7  ;;  %v913_v1 = vmul.f32 %v2766_v4, %v882_v43  ;;  %v914_v59 = vmul.f32 %v2774_v27, %v882_v43 }
 0x29a   :  { %v919_v6 = vadd.f32 %v918_v25, %v883_v45  ;;  %v920_v38 = vadd.f32 %v918_v25, %v884_v13  ;;  %v921_v8 = vadd.f32 %v918_v25, %v885_v46  ;;  %v922_v44 = vadd.f32 %v918_v25, %v886_v19 }
 0x29b   :  { %v923_v9 = vadd.f32 %v918_v25, %v887_v47  ;;  %v924_v63 = vadd.f32 %v918_v25, %v888_v35  ;;  %v925_v10 = vadd.f32 %v918_v25, %v889_v33  ;;  %v926_v41 = vadd.f32 %v918_v25, %v890_v51 }
 0x29c   :  { %v927_v29 = vadd.f32 %v918_v25, %v891_v61  ;;  %v928_v3 = vadd.f32 %v918_v25, %v892_v39  ;;  %v929_v31 = vadd.f32 %v918_v25, %v893_v24  ;;  %v930_v42 = vadd.f32 %v918_v25, %v894_v26 }
 0x29d   :  { %v931_v32 = vadd.f32 %v918_v25, %v895_v17  ;;  %v932_v36 = vadd.f32 %v918_v25, %v896_v12  ;;  %v933_v34 = vadd.f32 %v918_v25, %v897_v21  ;;  %v934_v7 = vadd.f32 %v918_v25, %v898_v57 }
 0x29e   :  { %v935_v5 = vadd.f32 %v918_v25, %v899_v28  ;;  %v936_v4 = vadd.f32 %v918_v25, %v900_v53  ;;  %v937_v11 = vadd.f32 %v918_v25, %v901_v20  ;;  %v938_v27 = vadd.f32 %v918_v25, %v902_v55 }
 0x29f   :  { %v939_v23 = vadd.f32 %v918_v25, %v903_v40  ;;  %v940_v18 = vadd.f32 %v918_v25, %v904_v50  ;;  %v941_v22 = vadd.f32 %v918_v25, %v905_v54  ;;  %v942_v37 = vadd.f32 %v918_v25, %v906_v49 }
 0x2a0   :  { %v943_v43 = vadd.f32 %v918_v25, %v907_v52  ;;  %v944_v0 = vadd.f32 %v918_v25, %v908_v30  ;;  %v945_v15 = vadd.f32 %v918_v25, %v909_v60  ;;  %v946_v45 = vadd.f32 %v918_v25, %v910_v16 }
 0x2a1   :  { %v947_v13 = vadd.f32 %v918_v25, %v911_v58  ;;  %v949_v46 = vadd.f32 %v918_v25, %v913_v1  ;;  %v950_v19 = vadd.f32 %v918_v25, %v914_v59  ;;  %v953_v47 = vmax.f32 %v921_v8, 0.0 }
 0x2a2   :  { %v954_v35 = vmax.f32 %v922_v44, 0.0  ;;  %v951_v48 = vmax.f32 %v919_v6, 0.0  ;;  %v952_v33 = vmax.f32 %v920_v38, 0.0  ;;  %v955_v51 = vmax.f32 %v923_v9, 0.0 }
 0x2a3   :  { %v956_v61 = vmax.f32 %v924_v63, 0.0  ;;  %v957_v39 = vmax.f32 %v925_v10, 0.0  ;;  %v958_v24 = vmax.f32 %v926_v41, 0.0  ;;  %v959_v26 = vmax.f32 %v927_v29, 0.0 }
 0x2a4   :  { %v984_v17 = vpack.c.bf16 %v954_v35, %v953_v47  ;;  %v983_v12 = vpack.c.bf16 %v952_v33, %v951_v48  ;;  %v960_v21 = vmax.f32 %v928_v3, 0.0  ;;  %v961_v57 = vmax.f32 %v929_v31, 0.0 }
 0x2a5   :  { %v985_v28 = vpack.c.bf16 %v956_v61, %v955_v51  ;;  %v986_v53 = vpack.c.bf16 %v958_v24, %v957_v39  ;;  %v962_v20 = vmax.f32 %v930_v42, 0.0  ;;  %v963_v55 = vmax.f32 %v931_v32, 0.0 }
 0x2a6   :  { %2000 = vmatprep.mubr.bf16.mxu0 %v983_v12  ;;  %v987_v40 = vpack.c.bf16 %v960_v21, %v959_v26  ;;  %v964_v25 = vmax.f32 %v932_v36, 0.0  ;;  %v965_v50 = vmax.f32 %v933_v34, 0.0  ;;  %v966_v54 = vmax.f32 %v934_v7, 0.0 }
 0x2a7   :  { %2001 = vmatmul.mubr.bf16.vlgmr.msra.gmra.mrb[32].mxu0 %v984_v17  ;;  %v988_v49 = vpack.c.bf16 %v962_v20, %v961_v57  ;;  %v967_v52 = vmax.f32 %v935_v5, 0.0  ;;  %v968_v30 = vmax.f32 %v936_v4, 0.0  ;;  %v969_v60 = vmax.f32 %v937_v11, 0.0 }
 0x2a8   :  { %2004 = vmatprep.mubr.bf16.mxu0 %v985_v28  ;;  %v989_v16 = vpack.c.bf16 %v964_v25, %v963_v55  ;;  %v990_v58 = vpack.c.bf16 %v966_v54, %v965_v50  ;;  %v970_v1 = vmax.f32 %v938_v27, 0.0  ;;  %v971_v59 = vmax.f32 %v939_v23, 0.0  ;;  %v2117_v27 = vld [vmem:[%s3093_s4 + $0x8] sm:$0xff]   ;;  %v2118_v23 = vld [vmem:[%s3093_s4 + $0x10] sm:$0xff]  }
 0x2a9   :  { %v991_v6 = vpack.c.bf16 %v968_v30, %v967_v52  ;;  %v972_v38 = vmax.f32 %v940_v18, 0.0  ;;  %v973_v8 = vmax.f32 %v941_v22, 0.0  ;;  %v974_v44 = vmax.f32 %v942_v37, 0.0  ;;  %v2119_v18 = vld [vmem:[%s3093_s4 + $0x18] sm:$0xff]   ;;  %v2120_v22 = vld [vmem:[%s3093_s4 + $0x20] sm:$0xff]   ;;  %v2121_v37 = vld [vmem:[%s3093_s4 + $0x28] sm:$0xff]  }
 0x2aa   :  { %v992_v9 = vpack.c.bf16 %v970_v1, %v969_v60  ;;  %v975_v63 = vmax.f32 %v943_v43, 0.0  ;;  %v976_v10 = vmax.f32 %v944_v0, 0.0  ;;  %v977_v41 = vmax.f32 %v945_v15, 0.0  ;;  %v2122_v43 = vld [vmem:[%s3093_s4 + $0x30] sm:$0xff]   ;;  %v2123_v0 = vld [vmem:[%s3093_s4 + $0x38] sm:$0xff]  }
 0x2ab   :  { %v993_v29 = vpack.c.bf16 %v972_v38, %v971_v59  ;;  %v994_v3 = vpack.c.bf16 %v974_v44, %v973_v8  ;;  %v978_v31 = vmax.f32 %v946_v45, 0.0  ;;  %v979_v42 = vmax.f32 %v947_v13, 0.0 }
 0x2ac   :  { %v995_v32 = vpack.c.bf16 %v976_v10, %v975_v63  ;;  %v980_v36 = vmax.f32 %v2807_v56, 0.0  ;;  %v981_v34 = vmax.f32 %v949_v46, 0.0  ;;  %v982_v7 = vmax.f32 %v950_v19, 0.0  ;;  %v2116_v56 = vld [vmem:[%s3093_s4] sm:$0xff]  }
 0x2ad   :  { %v996_v5 = vpack.c.bf16 %v978_v31, %v977_v41  ;;  %2080 = vmatprep.subr.bf16.mxu1 %v2116_v56  ;;  %2032 = vmatprep.subr.bf16.mxu0 %v2116_v56 }
 0x2ae   :  { %v997_v4 = vpack.c.bf16 %v980_v36, %v979_v42  ;;  %v998_v11 = vpack.c.bf16 %v982_v7, %v981_v34  ;;  %2088 = vmatpush3.bf16.msra.mxu1 %v2116_v56  ;;  %2033 = vmatpush3.bf16.msra.mxu0 %v2116_v56 }
 0x2af   :  { %2005 = vmatmul.mubr.bf16.gmra.mrb[36].mxu0 %v986_v53  ;;  %2081 = vmatprep.subr.bf16.mxu1 %v2117_v27 }
 0x2b0   :  { %2008 = vmatprep.mubr.bf16.mxu0 %v987_v40  ;;  %2034 = vmatprep.subr.bf16.mxu0 %v2117_v27 }
 0x2b2   :  { %2089 = vmatpush3.bf16.msra.mxu1 %v2117_v27  ;;  %2035 = vmatpush3.bf16.msra.mxu0 %v2117_v27 }
 0x2b3   :  { %2082 = vmatprep.subr.bf16.mxu1 %v2118_v23  ;;  %2036 = vmatprep.subr.bf16.mxu0 %v2118_v23 }
 0x2b6   :  { %2090 = vmatpush3.bf16.msra.mxu1 %v2118_v23  ;;  %2037 = vmatpush3.bf16.msra.mxu0 %v2118_v23 }
 0x2b7   :  { %2009 = vmatmul.mubr.bf16.gmra.mrb[40].mxu0 %v988_v49  ;;  %2083 = vmatprep.subr.bf16.mxu1 %v2119_v18 }
 0x2b8   :  { %2012 = vmatprep.mubr.bf16.mxu0 %v989_v16  ;;  %2038 = vmatprep.subr.bf16.mxu0 %v2119_v18 }
 0x2ba   :  { %2091 = vmatpush3.bf16.msra.mxu1 %v2119_v18  ;;  %2039 = vmatpush3.bf16.msra.mxu0 %v2119_v18 }
 0x2bb   :  { %2084 = vmatprep.subr.bf16.mxu1 %v2120_v22  ;;  %2040 = vmatprep.subr.bf16.mxu0 %v2120_v22 }
 0x2be   :  { %2092 = vmatpush3.bf16.msra.mxu1 %v2120_v22  ;;  %2041 = vmatpush3.bf16.msra.mxu0 %v2120_v22 }
 0x2bf   :  { %2013 = vmatmul.mubr.bf16.gmra.mrb[44].mxu0 %v990_v58  ;;  %2085 = vmatprep.subr.bf16.mxu1 %v2121_v37 }
 0x2c0   :  { %2016 = vmatprep.mubr.bf16.mxu0 %v991_v6  ;;  %2042 = vmatprep.subr.bf16.mxu0 %v2121_v37 }
 0x2c2   :  { %2093 = vmatpush3.bf16.msra.mxu1 %v2121_v37  ;;  %2043 = vmatpush3.bf16.msra.mxu0 %v2121_v37 }
 0x2c3   :  { %2086 = vmatprep.subr.bf16.mxu1 %v2122_v43  ;;  %2044 = vmatprep.subr.bf16.mxu0 %v2122_v43 }
 0x2c6   :  { %2094 = vmatpush3.bf16.msra.mxu1 %v2122_v43  ;;  %2045 = vmatpush3.bf16.msra.mxu0 %v2122_v43 }
 0x2c7   :  { %2017 = vmatmul.mubr.bf16.gmra.mrb[48].mxu0 %v992_v9  ;;  %2087 = vmatprep.subr.bf16.mxu1 %v2123_v0 }
 0x2c8   :  { %2020 = vmatprep.mubr.bf16.mxu0 %v993_v29  ;;  %2046 = vmatprep.subr.bf16.mxu0 %v2123_v0 }
 0x2ca   :  { %2095 = vmatpush3.bf16.msra.mxu1 %v2123_v0  ;;  %2047 = vmatpush3.bf16.msra.mxu0 %v2123_v0 }
 0x2cf   :  { %2021 = vmatmul.mubr.bf16.gmra.mrb[52].mxu0 %v994_v3 }
 0x2d0   :  { %2024 = vmatprep.mubr.bf16.mxu0 %v995_v32 }
 0x2d7   :  { %2025 = vmatmul.mubr.bf16.gmra.mrb[56].mxu0 %v996_v5 }
 0x2d8   :  { %2028 = vmatprep.mubr.bf16.mxu0 %v997_v4 }
 0x2df   :  { %2029 = vmatmul.mubr.bf16.gmra.mrb[60].mxu0 %v998_v11 }
 0x37a   :  { %v2845_v15 = vpop.f32.mrb[32].mxu0 }
 0x37b   :  { %v2847_v45 = vpop.f32.mrb[33].mxu0  ;;  %v1264_v48 = vmul.f32 %v2845_v15, %v2845_v15 }
 0x37c   :  { %v2849_v13 = vpop.f32.mrb[34].mxu0  ;;  %v1262_v19 = vmul.f32 %v2847_v45, %v2847_v45 }
 0x37d   :  { %v2851_v46 = vpop.f32.mrb[35].mxu0  ;;  %v1265_v61 = vmul.f32 %v2849_v13, %v2849_v13 }
 0x37e   :  { %v1224_v47 = vadd.f32 %v2851_v46, %v2847_v45  ;;  %v1263_v35 = vmul.f32 %v2851_v46, %v2851_v46 }
 0x380   :  { %v1225_v33 = vadd.f32 %v2845_v15, %v1224_v47  ;;  %v1294_v51 = vadd.f32 %v1263_v35, %v1262_v19 }
 0x382   :  { %v1295_v39 = vadd.f32 %v1294_v51, %v1264_v48  ;;  %v2864_v24 = vpop.f32.mrb[36].mxu0  ;;  %v1226_v26 = vadd.f32 %v2849_v13, %v1225_v33 }
 0x383   :  { %v2867_v17 = vpop.f32.mrb[37].mxu0  ;;  %v1268_v25 = vmul.f32 %v2864_v24, %v2864_v24 }
 0x384   :  { %v1227_v12 = vadd.f32 %v1226_v26, %v2867_v17  ;;  %v1266_v21 = vmul.f32 %v2867_v17, %v2867_v17  ;;  %v1296_v57 = vadd.f32 %v1295_v39, %v1265_v61  ;;  %v2872_v28 = vpop.f32.mrb[38].mxu0 }
 0x385   :  { %v2874_v53 = vpop.f32.mrb[39].mxu0  ;;  %v1269_v49 = vmul.f32 %v2872_v28, %v2872_v28 }
 0x386   :  { %v1297_v20 = vadd.f32 %v1296_v57, %v1266_v21  ;;  %v1228_v55 = vadd.f32 %v1227_v12, %v2874_v53  ;;  %v1267_v40 = vmul.f32 %v2874_v53, %v2874_v53 }
 0x388   :  { %v1229_v50 = vadd.f32 %v2864_v24, %v1228_v55  ;;  %v1298_v54 = vadd.f32 %v1297_v20, %v1267_v40 }
 0x38a   :  { %v1299_v52 = vadd.f32 %v1298_v54, %v1268_v25  ;;  %v2884_v30 = vpop.f32.mrb[40].mxu0  ;;  %v1230_v60 = vadd.f32 %v2872_v28, %v1229_v50 }
 0x38b   :  { %v2887_v16 = vpop.f32.mrb[41].mxu0  ;;  %v1272_v63 = vmul.f32 %v2884_v30, %v2884_v30 }
 0x38c   :  { %v1231_v58 = vadd.f32 %v1230_v60, %v2887_v16  ;;  %v1270_v1 = vmul.f32 %v2887_v16, %v2887_v16  ;;  %v1300_v59 = vadd.f32 %v1299_v52, %v1269_v49  ;;  %v2892_v6 = vpop.f32.mrb[42].mxu0 }
 0x38d   :  { %v2894_v38 = vpop.f32.mrb[43].mxu0  ;;  %v1273_v29 = vmul.f32 %v2892_v6, %v2892_v6 }
 0x38e   :  { %v1301_v8 = vadd.f32 %v1300_v59, %v1270_v1  ;;  %v1232_v44 = vadd.f32 %v1231_v58, %v2894_v38  ;;  %v1271_v9 = vmul.f32 %v2894_v38, %v2894_v38 }
 0x390   :  { %v1233_v10 = vadd.f32 %v2884_v30, %v1232_v44  ;;  %v1302_v41 = vadd.f32 %v1301_v8, %v1271_v9 }
 0x392   :  { %v1303_v3 = vadd.f32 %v1302_v41, %v1272_v63  ;;  %v2904_v31 = vpop.f32.mrb[44].mxu0  ;;  %v1234_v42 = vadd.f32 %v2892_v6, %v1233_v10 }
 0x393   :  { %v2907_v32 = vpop.f32.mrb[45].mxu0  ;;  %v1276_v23 = vmul.f32 %v2904_v31, %v2904_v31 }
 0x394   :  { %v1235_v36 = vadd.f32 %v1234_v42, %v2907_v32  ;;  %v1274_v34 = vmul.f32 %v2907_v32, %v2907_v32  ;;  %v1304_v7 = vadd.f32 %v1303_v3, %v1273_v29  ;;  %v2912_v5 = vpop.f32.mrb[46].mxu0 }
 0x395   :  { %v2914_v4 = vpop.f32.mrb[47].mxu0  ;;  %v1277_v37 = vmul.f32 %v2912_v5, %v2912_v5 }
 0x396   :  { %v1305_v11 = vadd.f32 %v1304_v7, %v1274_v34  ;;  %v1236_v56 = vadd.f32 %v1235_v36, %v2914_v4  ;;  %v1275_v27 = vmul.f32 %v2914_v4, %v2914_v4 }
 0x398   :  { %v1237_v18 = vadd.f32 %v2904_v31, %v1236_v56  ;;  %v1306_v22 = vadd.f32 %v1305_v11, %v1275_v27 }
 0x39a   :  { %v1307_v43 = vadd.f32 %v1306_v22, %v1276_v23  ;;  %v2924_v0 = vpop.f32.mrb[48].mxu0  ;;  %v1238_v19 = vadd.f32 %v2912_v5, %v1237_v18 }
 0x39b   :  { %v2927_v47 = vpop.f32.mrb[49].mxu0  ;;  %v1280_v21 = vmul.f32 %v2924_v0, %v2924_v0 }
 0x39c   :  { %v1239_v35 = vadd.f32 %v1238_v19, %v2927_v47  ;;  %v1278_v48 = vmul.f32 %v2927_v47, %v2927_v47  ;;  %v1308_v33 = vadd.f32 %v1307_v43, %v1277_v37  ;;  %v2932_v51 = vpop.f32.mrb[50].mxu0 }
 0x39d   :  { %v2934_v61 = vpop.f32.mrb[51].mxu0  ;;  %v1281_v55 = vmul.f32 %v2932_v51, %v2932_v51 }
 0x39e   :  { %v1309_v39 = vadd.f32 %v1308_v33, %v1278_v48  ;;  %v1240_v26 = vadd.f32 %v1239_v35, %v2934_v61  ;;  %v1279_v12 = vmul.f32 %v2934_v61, %v2934_v61 }
 0x3a0   :  { %v1241_v57 = vadd.f32 %v2924_v0, %v1240_v26  ;;  %v1310_v20 = vadd.f32 %v1309_v39, %v1279_v12 }
 0x3a2   :  { %v1311_v40 = vadd.f32 %v1310_v20, %v1280_v21  ;;  %v2944_v25 = vpop.f32.mrb[52].mxu0  ;;  %v1242_v50 = vadd.f32 %v2932_v51, %v1241_v57 }
 0x3a3   :  { %v2947_v54 = vpop.f32.mrb[53].mxu0  ;;  %v1284_v9 = vmul.f32 %v2944_v25, %v2944_v25 }
 0x3a4   :  { %v1243_v49 = vadd.f32 %v1242_v50, %v2947_v54  ;;  %v1282_v52 = vmul.f32 %v2947_v54, %v2947_v54  ;;  %v1312_v60 = vadd.f32 %v1311_v40, %v1281_v55  ;;  %v2952_v58 = vpop.f32.mrb[54].mxu0 }
 0x3a5   :  { %v2954_v1 = vpop.f32.mrb[55].mxu0  ;;  %v1285_v41 = vmul.f32 %v2952_v58, %v2952_v58 }
 0x3a6   :  { %v1313_v59 = vadd.f32 %v1312_v60, %v1282_v52  ;;  %v1244_v8 = vadd.f32 %v1243_v49, %v2954_v1  ;;  %v1283_v44 = vmul.f32 %v2954_v1, %v2954_v1 }
 0x3a8   :  { %v1245_v63 = vadd.f32 %v2944_v25, %v1244_v8  ;;  %v1314_v10 = vadd.f32 %v1313_v59, %v1283_v44 }
 0x3aa   :  { %v1315_v29 = vadd.f32 %v1314_v10, %v1284_v9  ;;  %v2964_v3 = vpop.f32.mrb[56].mxu0  ;;  %v1246_v42 = vadd.f32 %v2952_v58, %v1245_v63 }
 0x3ab   :  { %v2967_v36 = vpop.f32.mrb[57].mxu0  ;;  %v1288_v37 = vmul.f32 %v2964_v3, %v2964_v3 }
 0x3ac   :  { %v1247_v34 = vadd.f32 %v1246_v42, %v2967_v36  ;;  %v1286_v7 = vmul.f32 %v2967_v36, %v2967_v36  ;;  %v1316_v11 = vadd.f32 %v1315_v29, %v1285_v41  ;;  %v2972_v56 = vpop.f32.mrb[58].mxu0 }
 0x3ad   :  { %v2974_v27 = vpop.f32.mrb[59].mxu0  ;;  %v1289_v35 = vmul.f32 %v2972_v56, %v2972_v56 }
 0x3ae   :  { %v1317_v23 = vadd.f32 %v1316_v11, %v1286_v7  ;;  %v1248_v18 = vadd.f32 %v1247_v34, %v2974_v27  ;;  %v1287_v22 = vmul.f32 %v2974_v27, %v2974_v27 }
 0x3b0   :  { %v1249_v43 = vadd.f32 %v2964_v3, %v1248_v18  ;;  %v1318_v19 = vadd.f32 %v1317_v23, %v1287_v22 }
 0x3b2   :  { %v1319_v48 = vadd.f32 %v1318_v19, %v1288_v37  ;;  %v2984_v33 = vpop.f32.mrb[60].mxu0  ;;  %v1250_v39 = vadd.f32 %v2972_v56, %v1249_v43 }
 0x3b3   :  { %v2987_v26 = vpop.f32.mrb[61].mxu0  ;;  %v1292_v52 = vmul.f32 %v2984_v33, %v2984_v33 }
 0x3b4   :  { %v1251_v12 = vadd.f32 %v1250_v39, %v2987_v26  ;;  %v1290_v21 = vmul.f32 %v2987_v26, %v2987_v26  ;;  %v1320_v57 = vadd.f32 %v1319_v48, %v1289_v35  ;;  %v2992_v20 = vpop.f32.mrb[62].mxu0 }
 0x3b5   :  { %v1212_v55 = vpop.f32.mrb[63].mxu0  ;;  %v1293_v8 = vmul.f32 %v2992_v20, %v2992_v20 }
 0x3b6   :  { %v1321_v40 = vadd.f32 %v1320_v57, %v1290_v21  ;;  %v1252_v50 = vadd.f32 %v1251_v12, %v1212_v55  ;;  %v1291_v49 = vmul.f32 %v1212_v55, %v1212_v55  ;;  %v27_v57 = vld [vmem:[%s3094_s5 + $0x8] sm:$0x7] }
 0x3b8   :  { %v1253_v60 = vadd.f32 %v2984_v33, %v1252_v50  ;;  %v1322_v59 = vadd.f32 %v1321_v40, %v1291_v49 }
 0x3ba   :  { %v1254_v44 = vadd.f32 %v2992_v20, %v1253_v60  ;;  %v1323_v9 = vadd.f32 %v1322_v59, %v1292_v52 }
 0x3bc   :  { %v1255_v63 = vrot.slane %v1254_v44, 4  ;;  %v1324_v10 = vadd.f32 %v1323_v9, %v1293_v8 }
 0x3be   :  { %v1256_v41 = vadd.f32 %v1255_v63, %v1254_v44  ;;  %v1325_v29 = vrot.slane %v1324_v10, 4 }
 0x3c0   :  { %v1257_v42 = vrot.slane %v1256_v41, 2  ;;  %v1326_v34 = vadd.f32 %v1325_v29, %v1324_v10 }
 0x3c2   :  { %v1258_v7 = vadd.f32 %v1257_v42, %v1256_v41  ;;  %v1327_v11 = vrot.slane %v1326_v34, 2 }
 0x3c4   :  { %v1259_v23 = vrot.slane %v1258_v7, 1  ;;  %v1328_v18 = vadd.f32 %v1327_v11, %v1326_v34 }
 0x3c6   :  { %v1260_v22 = vadd.f32 %v1259_v23, %v1258_v7  ;;  %v1329_v37 = vrot.slane %v1328_v18, 1 }
 0x3c8   :  { %v1261_v43 = vmul.f32 0.00390625, %v1260_v22  ;;  %v1330_v19 = vadd.f32 %v1329_v37, %v1328_v18 }
 0x3ca   :  { %v1331_v35 = vmul.f32 0.00390625, %v1330_v19  ;;  %v1332_v48 = vmul.f32 %v1261_v43, %v1261_v43 }
 0x3cc   :  { %v1333_v39 = vsub.f32 %v1331_v35, %v1332_v48 }
 0x3ce   :  { %v1334_v12 = vmax.f32 %v1333_v39, 0.0 }
 0x3d0   :  { %v1335_v21 = vadd.f32 1e-05, %v1334_v12 }
 0x3d2   :  { %2128 = vrsqrt.f32 %v1335_v21 }
 0x3dc   :  { %v2129_v40 = vpop.eup %2128 }
 0x3dd   :  { %v1337_v50 = vmul.f32 %v2129_v40, %v27_v57 }
 0x3df   :  { %v1338_v49 = vmul.f32 %v1337_v50, %v1261_v43  ;;  %v1346_v52 = vrot.slane %v1337_v50, %v2556_v2 }
 0x3e1   :  { %v1340_v60 = vrot.slane %v1338_v49, 7  ;;  %v1376_v59 = vmul.f32 %v1346_v52, %v1212_v55  ;;  %v1347_v8 = vmul.f32 %v1346_v52, %v2847_v45  ;;  %v1348_v44 = vmul.f32 %v1346_v52, %v2851_v46 }
 0x3e2   :  { %v1349_v9 = vmul.f32 %v2845_v15, %v1346_v52  ;;  %v1350_v63 = vmul.f32 %v2849_v13, %v1346_v52  ;;  %v1351_v10 = vmul.f32 %v1346_v52, %v2867_v17  ;;  %v1352_v41 = vmul.f32 %v1346_v52, %v2874_v53 }
 0x3e3   :  { %v1342_v29 = vsub.f32 %v27_v57, %v1340_v60  ;;  %v1353_v42 = vmul.f32 %v2864_v24, %v1346_v52  ;;  %v1354_v34 = vmul.f32 %v2872_v28, %v1346_v52  ;;  %v1355_v2 = vmul.f32 %v1346_v52, %v2887_v16 }
 0x3e4   :  { %v1356_v55 = vmul.f32 %v1346_v52, %v2894_v38  ;;  %v1357_v45 = vmul.f32 %v2884_v30, %v1346_v52  ;;  %v1358_v46 = vmul.f32 %v2892_v6, %v1346_v52  ;;  %v1359_v15 = vmul.f32 %v1346_v52, %v2907_v32 }
 0x3e5   :  { %v1382_v13 = vrot.slane %v1342_v29, %v2560_v14  ;;  %v1360_v17 = vmul.f32 %v1346_v52, %v2914_v4  ;;  %v1361_v53 = vmul.f32 %v2904_v31, %v1346_v52  ;;  %v1362_v24 = vmul.f32 %v2912_v5, %v1346_v52 }
 0x3e6   :  { %v1363_v28 = vmul.f32 %v1346_v52, %v2927_v47  ;;  %v1364_v16 = vmul.f32 %v1346_v52, %v2934_v61  ;;  %v1365_v38 = vmul.f32 %v2924_v0, %v1346_v52  ;;  %v1366_v30 = vmul.f32 %v2932_v51, %v1346_v52 }
 0x3e7   :  { %v3025_v7 = vadd.f32 %v1382_v13, %v1376_v59  ;;  %v1367_v6 = vmul.f32 %v1346_v52, %v2947_v54  ;;  %v1368_v14 = vmul.f32 %v1346_v52, %v2954_v1  ;;  %v1369_v32 = vmul.f32 %v2944_v25, %v1346_v52 }
 0x3e8   :  { %v1370_v31 = vmul.f32 %v2952_v58, %v1346_v52  ;;  %v1371_v5 = vmul.f32 %v1346_v52, %v2967_v36  ;;  %v1372_v4 = vmul.f32 %v1346_v52, %v2974_v27  ;;  %v1373_v47 = vmul.f32 %v2964_v3, %v1346_v52 }
 0x3e9   :  { %v1374_v0 = vmul.f32 %v2972_v56, %v1346_v52  ;;  %v1375_v51 = vmul.f32 %v1346_v52, %v2987_v26  ;;  %v1377_v61 = vmul.f32 %v2984_v33, %v1346_v52  ;;  %v1378_v54 = vmul.f32 %v2992_v20, %v1346_v52 }
 0x3ea   :  { %v1383_v11 = vadd.f32 %v1382_v13, %v1347_v8  ;;  %v1384_v1 = vadd.f32 %v1382_v13, %v1348_v44  ;;  %v1385_v23 = vadd.f32 %v1382_v13, %v1349_v9  ;;  %v1386_v25 = vadd.f32 %v1382_v13, %v1350_v63 }
 0x3eb   :  { %v1387_v18 = vadd.f32 %v1382_v13, %v1351_v10  ;;  %v1388_v58 = vadd.f32 %v1382_v13, %v1352_v41  ;;  %v1389_v22 = vadd.f32 %v1382_v13, %v1353_v42  ;;  %v1390_v36 = vadd.f32 %v1382_v13, %v1354_v34 }
 0x3ec   :  { %v1391_v37 = vadd.f32 %v1382_v13, %v1355_v2  ;;  %v1392_v27 = vadd.f32 %v1382_v13, %v1356_v55  ;;  %v1393_v43 = vadd.f32 %v1382_v13, %v1357_v45  ;;  %v1394_v3 = vadd.f32 %v1382_v13, %v1358_v46 }
 0x3ed   :  { %v1395_v19 = vadd.f32 %v1382_v13, %v1359_v15  ;;  %v1396_v56 = vadd.f32 %v1382_v13, %v1360_v17  ;;  %v1397_v35 = vadd.f32 %v1382_v13, %v1361_v53  ;;  %v1398_v26 = vadd.f32 %v1382_v13, %v1362_v24 }
 0x3ee   :  { %v1399_v48 = vadd.f32 %v1382_v13, %v1363_v28  ;;  %v1400_v33 = vadd.f32 %v1382_v13, %v1364_v16  ;;  %v1401_v39 = vadd.f32 %v1382_v13, %v1365_v38  ;;  %v1402_v20 = vadd.f32 %v1382_v13, %v1366_v30 }
 0x3ef   :  { %v1403_v12 = vadd.f32 %v1382_v13, %v1367_v6  ;;  %v1404_v21 = vadd.f32 %v1382_v13, %v1368_v14  ;;  %v1405_v57 = vadd.f32 %v1382_v13, %v1369_v32  ;;  %v1406_v40 = vadd.f32 %v1382_v13, %v1370_v31 }
 0x3f0   :  { %v1407_v50 = vadd.f32 %v1382_v13, %v1371_v5  ;;  %v1408_v49 = vadd.f32 %v1382_v13, %v1372_v4  ;;  %v1409_v52 = vadd.f32 %v1382_v13, %v1373_v47  ;;  %v1410_v60 = vadd.f32 %v1382_v13, %v1374_v0 }
 0x3f1   :  { %v1411_v59 = vadd.f32 %v1382_v13, %v1375_v51  ;;  %v1413_v8 = vadd.f32 %v1382_v13, %v1377_v61  ;;  %v1414_v44 = vadd.f32 %v1382_v13, %v1378_v54  ;;  %v1417_v9 = vmax.f32 %v1385_v23, 0.0 }
 0x3f2   :  { %v1418_v63 = vmax.f32 %v1386_v25, 0.0  ;;  %v1421_v10 = vmax.f32 %v1389_v22, 0.0  ;;  %v1422_v41 = vmax.f32 %v1390_v36, 0.0  ;;  %v1415_v29 = vmax.f32 %v1383_v11, 0.0 }
 0x3f3   :  { %v1416_v42 = vmax.f32 %v1384_v1, 0.0  ;;  %v1419_v34 = vmax.f32 %v1387_v18, 0.0  ;;  %v1420_v2 = vmax.f32 %v1388_v58, 0.0  ;;  %v1423_v55 = vmax.f32 %v1391_v37, 0.0 }
 0x3f4   :  { %v1448_v45 = vpack.c.bf16 %v1418_v63, %v1417_v9  ;;  %v1450_v46 = vpack.c.bf16 %v1422_v41, %v1421_v10  ;;  %v1424_v15 = vmax.f32 %v1392_v27, 0.0  ;;  %v1425_v17 = vmax.f32 %v1393_v43, 0.0 }
 0x3f5   :  { %v1447_v53 = vpack.c.bf16 %v1416_v42, %v1415_v29  ;;  %v1449_v24 = vpack.c.bf16 %v1420_v2, %v1419_v34  ;;  %v1426_v28 = vmax.f32 %v1394_v3, 0.0  ;;  %v1427_v16 = vmax.f32 %v1395_v19, 0.0 }
 0x3f6   :  { %v1451_v38 = vpack.c.bf16 %v1424_v15, %v1423_v55  ;;  %v1428_v30 = vmax.f32 %v1396_v56, 0.0  ;;  %v1429_v13 = vmax.f32 %v1397_v35, 0.0  ;;  %v1430_v6 = vmax.f32 %v1398_v26, 0.0 }
 0x3f7   :  { %2048 = vmatprep.mubr.bf16.mxu0 %v1447_v53  ;;  %2052 = vmatprep.mubr.bf16.mxu1 %v1449_v24  ;;  %v1452_v14 = vpack.c.bf16 %v1426_v28, %v1425_v17  ;;  %v1431_v32 = vmax.f32 %v1399_v48, 0.0  ;;  %v1432_v31 = vmax.f32 %v1400_v33, 0.0  ;;  %v1433_v5 = vmax.f32 %v1401_v39, 0.0 }
 0x3f8   :  { %2049 = vmatmul.mubr.bf16.vlgmr.msra.gmra.mrb[64].mxu0 %v1448_v45  ;;  %2053 = vmatmul.mubr.bf16.vlgmr.msra.gmra.mrb[32].mxu1 %v1450_v46  ;;  %v1453_v4 = vpack.c.bf16 %v1428_v30, %v1427_v16  ;;  %v1454_v47 = vpack.c.bf16 %v1430_v6, %v1429_v13  ;;  %v1434_v0 = vmax.f32 %v1402_v20, 0.0  ;;  %v1435_v51 = vmax.f32 %v1403_v12, 0.0 }
 0x3f9   :  { %2056 = vmatprep.mubr.bf16.mxu1 %v1451_v38  ;;  %v1455_v61 = vpack.c.bf16 %v1432_v31, %v1431_v32  ;;  %v1436_v54 = vmax.f32 %v1404_v21, 0.0  ;;  %v1437_v11 = vmax.f32 %v1405_v57, 0.0  ;;  %v1438_v1 = vmax.f32 %v1406_v40, 0.0 }
 0x3fa   :  { %v1456_v23 = vpack.c.bf16 %v1434_v0, %v1433_v5  ;;  %v1439_v25 = vmax.f32 %v1407_v50, 0.0  ;;  %v1440_v18 = vmax.f32 %v1408_v49, 0.0  ;;  %v1441_v58 = vmax.f32 %v1409_v52, 0.0 }
 0x3fb   :  { %v1457_v22 = vpack.c.bf16 %v1436_v54, %v1435_v51  ;;  %v1458_v36 = vpack.c.bf16 %v1438_v1, %v1437_v11  ;;  %v1442_v37 = vmax.f32 %v1410_v60, 0.0  ;;  %v1443_v27 = vmax.f32 %v1411_v59, 0.0 }
 0x3fc   :  { %v1459_v43 = vpack.c.bf16 %v1440_v18, %v1439_v25  ;;  %v1444_v3 = vmax.f32 %v3025_v7, 0.0  ;;  %v1445_v19 = vmax.f32 %v1413_v8, 0.0  ;;  %v1446_v56 = vmax.f32 %v1414_v44, 0.0  ;;  %v28_v7 = vld [vmem:[%s3094_s5 + $0xc] sm:$0x7]  ;;  %s2218_s5 = smov [#allocation2]  }
 0x3fd   :  { %v1460_v35 = vpack.c.bf16 %v1442_v37, %v1441_v58  ;;  %v1481_v33 = vsub.s32 0, %v2550_v62  ;;  %s1761_s12 = sshll.u32 %s2218_s5, 4  ;;  %s1762_s12 = int_to_ptr.vmem [resolvable:$true] %s1761_s12 }
 0x3fe   :  { %v1461_v26 = vpack.c.bf16 %v1444_v3, %v1443_v27  ;;  %v1462_v48 = vpack.c.bf16 %v1446_v56, %v1445_v19  ;;  %s2194_s13 = scalar_lea.vmem %s1762_s12, 4096  ;;  %p2199_p1 = scmp.lt.s32.totalorder %s1762_s12, %s1762_s12 }
 0x3ff   :  { %v3043_v39 = vrot.slane %v28_v7, %v1481_v33  ;;  %p2195_p0 = scmp.ne.s32.totalorder %s1762_s12, %s2194_s13  ;;  %p2200_p2 = scmp.lt.s32.totalorder %s2194_s13, %s2194_s13 }
 0x400   :  { %2057 = vmatmul.mubr.bf16.gmra.mrb[36].mxu1 %v1452_v14 }
 0x401   :  { %2060 = vmatprep.mubr.bf16.mxu1 %v1453_v4  ;;  %p2201_p3 = por %p2200_p2, %p2199_p1 }
 0x403   :  { %p2202_p4 = pnand %p2201_p3, %p2195_p0 }
 0x408   :  { %2061 = vmatmul.mubr.bf16.gmra.mrb[40].mxu1 %v1454_v47 }
 0x409   :  { %2064 = vmatprep.mubr.bf16.mxu1 %v1455_v61 }
 0x410   :  { %2065 = vmatmul.mubr.bf16.gmra.mrb[44].mxu1 %v1456_v23 }
 0x411   :  { %2068 = vmatprep.mubr.bf16.mxu1 %v1457_v22 }
 0x418   :  { %2069 = vmatmul.mubr.bf16.gmra.mrb[48].mxu1 %v1458_v36 }
 0x419   :  { %2072 = vmatprep.mubr.bf16.mxu1 %v1459_v43 }
 0x420   :  { %2073 = vmatmul.mubr.bf16.gmra.mrb[52].mxu1 %v1460_v35 }
 0x421   :  { %2076 = vmatprep.mubr.bf16.mxu1 %v1461_v26 }
 0x428   :  { %2077 = vmatmul.mubr.bf16.gmra.mrb[56].mxu1 %v1462_v48 }
 0x4cb   :  { %v2050_v20 = vpop.f32.mrb[64].mxu0  ;;  %v2054_v12 = vpop.f32.mrb[32].mxu1 }
 0x4cc   :  { %v1574_v21 = vadd.f32 %v2050_v20, %v3043_v39  ;;  %v1590_v57 = vadd.f32 %v2054_v12, %v3043_v39  ;;  %v1565_v40 = vpop.f32.mrb[65].mxu0  ;;  %v1581_v50 = vpop.f32.mrb[33].mxu1 }
 0x4cd   :  { %v1566_v49 = vadd.f32 %v1565_v40, %v3043_v39  ;;  %v1582_v52 = vadd.f32 %v1581_v50, %v3043_v39  ;;  %v2051_v60 = vpop.f32.mrb[66].mxu0  ;;  %v2055_v62 = vpop.f32.mrb[34].mxu1 }
 0x4ce   :  { %2130 = vtanh.f32 %v1574_v21  ;;  %v1577_v59 = vadd.f32 %v2051_v60, %v3043_v39  ;;  %v1593_v8 = vadd.f32 %v2055_v62, %v3043_v39  ;;  %v1568_v44 = vpop.f32.mrb[67].mxu0  ;;  %v1584_v9 = vpop.f32.mrb[35].mxu1 }
 0x4cf   :  { %2132 = vtanh.f32 %v1590_v57  ;;  %v1569_v63 = vadd.f32 %v1568_v44, %v3043_v39  ;;  %v1585_v10 = vadd.f32 %v1584_v9, %v3043_v39 }
 0x4d0   :  { %2134 = vtanh.f32 %v1566_v49 }
 0x4d1   :  { %2136 = vtanh.f32 %v1582_v52 }
 0x4d2   :  { %2138 = vtanh.f32 %v1577_v59 }
 0x4d3   :  { %2140 = vtanh.f32 %v1593_v8  ;;  %v2058_v41 = vpop.f32.mrb[36].mxu1 }
 0x4d4   :  { %2142 = vtanh.f32 %v1569_v63  ;;  %v1606_v29 = vadd.f32 %v2058_v41, %v3043_v39  ;;  %v1597_v42 = vpop.f32.mrb[37].mxu1 }
 0x4d5   :  { %2144 = vtanh.f32 %v1585_v10  ;;  %v1598_v34 = vadd.f32 %v1597_v42, %v3043_v39  ;;  %v2059_v2 = vpop.f32.mrb[38].mxu1 }
 0x4d6   :  { %2146 = vtanh.f32 %v1606_v29  ;;  %v1609_v55 = vadd.f32 %v2059_v2, %v3043_v39  ;;  %v1600_v45 = vpop.f32.mrb[39].mxu1 }
 0x4d7   :  { %2148 = vtanh.f32 %v1598_v34  ;;  %v1601_v46 = vadd.f32 %v1600_v45, %v3043_v39 }
 0x4d8   :  { %v2131_v15 = vpop.eup %2130  ;;  %2150 = vtanh.f32 %v1609_v55 }
 0x4d9   :  { %v2133_v17 = vpop.eup %2132  ;;  %1726 = vst [vmem:[#allocation2 + $0x10] sm:$0xff] %v2131_v15  ;;  %2152 = vtanh.f32 %v1601_v46 }
 0x4da   :  { %v2135_v53 = vpop.eup %2134  ;;  %1730 = vst [vmem:[#allocation2 + $0x30] sm:$0xff] %v2133_v17 }
 0x4db   :  { %v2137_v24 = vpop.eup %2136  ;;  %1724 = vst [vmem:[#allocation2] sm:$0xff] %v2135_v53  ;;  %v2062_v28 = vpop.f32.mrb[40].mxu1 }
 0x4dc   :  { %v2139_v16 = vpop.eup %2138  ;;  %1728 = vst [vmem:[#allocation2 + $0x20] sm:$0xff] %v2137_v24  ;;  %v1622_v38 = vadd.f32 %v2062_v28, %v3043_v39  ;;  %v1613_v30 = vpop.f32.mrb[41].mxu1 }
 0x4dd   :  { %v2141_v13 = vpop.eup %2140  ;;  %1727 = vst [vmem:[#allocation2 + $0x18] sm:$0xff] %v2139_v16  ;;  %v1614_v6 = vadd.f32 %v1613_v30, %v3043_v39  ;;  %v2063_v14 = vpop.f32.mrb[42].mxu1 }
 0x4de   :  { %v2143_v32 = vpop.eup %2142  ;;  %1731 = vst [vmem:[#allocation2 + $0x38] sm:$0xff] %v2141_v13  ;;  %2154 = vtanh.f32 %v1622_v38  ;;  %v1625_v31 = vadd.f32 %v2063_v14, %v3043_v39  ;;  %v1616_v5 = vpop.f32.mrb[43].mxu1 }
 0x4df   :  { %v2145_v4 = vpop.eup %2144  ;;  %1725 = vst [vmem:[#allocation2 + $0x8] sm:$0xff] %v2143_v32  ;;  %2156 = vtanh.f32 %v1614_v6  ;;  %v1617_v47 = vadd.f32 %v1616_v5, %v3043_v39 }
 0x4e0   :  { %v2147_v0 = vpop.eup %2146  ;;  %1729 = vst [vmem:[#allocation2 + $0x28] sm:$0xff] %v2145_v4  ;;  %2158 = vtanh.f32 %v1625_v31 }
 0x4e1   :  { %v2149_v51 = vpop.eup %2148  ;;  %1734 = vst [vmem:[#allocation2 + $0x50] sm:$0xff] %v2147_v0  ;;  %2160 = vtanh.f32 %v1617_v47 }
 0x4e2   :  { %v2151_v61 = vpop.eup %2150  ;;  %1732 = vst [vmem:[#allocation2 + $0x40] sm:$0xff] %v2149_v51 }
 0x4e3   :  { %v2153_v54 = vpop.eup %2152  ;;  %1735 = vst [vmem:[#allocation2 + $0x58] sm:$0xff] %v2151_v61  ;;  %v2066_v11 = vpop.f32.mrb[44].mxu1 }
 0x4e4   :  { %1733 = vst [vmem:[#allocation2 + $0x48] sm:$0xff] %v2153_v54  ;;  %v1638_v1 = vadd.f32 %v2066_v11, %v3043_v39  ;;  %v1629_v23 = vpop.f32.mrb[45].mxu1 }
 0x4e5   :  { %v1630_v25 = vadd.f32 %v1629_v23, %v3043_v39  ;;  %v2067_v18 = vpop.f32.mrb[46].mxu1 }
 0x4e6   :  { %2162 = vtanh.f32 %v1638_v1  ;;  %v1641_v58 = vadd.f32 %v2067_v18, %v3043_v39  ;;  %v1632_v22 = vpop.f32.mrb[47].mxu1 }
 0x4e7   :  { %2164 = vtanh.f32 %v1630_v25  ;;  %v1633_v36 = vadd.f32 %v1632_v22, %v3043_v39 }
 0x4e8   :  { %v2155_v37 = vpop.eup %2154  ;;  %2166 = vtanh.f32 %v1641_v58 }
 0x4e9   :  { %v2157_v27 = vpop.eup %2156  ;;  %1738 = vst [vmem:[#allocation2 + $0x70] sm:$0xff] %v2155_v37  ;;  %2168 = vtanh.f32 %v1633_v36 }
 0x4ea   :  { %v2159_v43 = vpop.eup %2158  ;;  %1736 = vst [vmem:[#allocation2 + $0x60] sm:$0xff] %v2157_v27 }
 0x4eb   :  { %v2161_v3 = vpop.eup %2160  ;;  %1739 = vst [vmem:[#allocation2 + $0x78] sm:$0xff] %v2159_v43  ;;  %v2070_v19 = vpop.f32.mrb[48].mxu1 }
 0x4ec   :  { %1737 = vst [vmem:[#allocation2 + $0x68] sm:$0xff] %v2161_v3  ;;  %v1654_v56 = vadd.f32 %v2070_v19, %v3043_v39  ;;  %v1645_v35 = vpop.f32.mrb[49].mxu1 }
 0x4ed   :  { %v1646_v26 = vadd.f32 %v1645_v35, %v3043_v39  ;;  %v2071_v48 = vpop.f32.mrb[50].mxu1 }
 0x4ee   :  { %2170 = vtanh.f32 %v1654_v56  ;;  %v1657_v33 = vadd.f32 %v2071_v48, %v3043_v39  ;;  %v1648_v7 = vpop.f32.mrb[51].mxu1 }
 0x4ef   :  { %2172 = vtanh.f32 %v1646_v26  ;;  %v1649_v20 = vadd.f32 %v1648_v7, %v3043_v39 }
 0x4f0   :  { %v2163_v12 = vpop.eup %2162  ;;  %2174 = vtanh.f32 %v1657_v33 }
 0x4f1   :  { %v2165_v21 = vpop.eup %2164  ;;  %1742 = vst [vmem:[#allocation2 + $0x90] sm:$0xff] %v2163_v12  ;;  %2176 = vtanh.f32 %v1649_v20 }
 0x4f2   :  { %v2167_v57 = vpop.eup %2166  ;;  %1740 = vst [vmem:[#allocation2 + $0x80] sm:$0xff] %v2165_v21 }
 0x4f3   :  { %v2169_v40 = vpop.eup %2168  ;;  %1743 = vst [vmem:[#allocation2 + $0x98] sm:$0xff] %v2167_v57  ;;  %v2074_v50 = vpop.f32.mrb[52].mxu1 }
 0x4f4   :  { %1741 = vst [vmem:[#allocation2 + $0x88] sm:$0xff] %v2169_v40  ;;  %v1670_v49 = vadd.f32 %v2074_v50, %v3043_v39  ;;  %v1661_v52 = vpop.f32.mrb[53].mxu1 }
 0x4f5   :  { %v1662_v60 = vadd.f32 %v1661_v52, %v3043_v39  ;;  %v2075_v62 = vpop.f32.mrb[54].mxu1 }
 0x4f6   :  { %2178 = vtanh.f32 %v1670_v49  ;;  %v1673_v59 = vadd.f32 %v2075_v62, %v3043_v39  ;;  %v1664_v8 = vpop.f32.mrb[55].mxu1 }
 0x4f7   :  { %2180 = vtanh.f32 %v1662_v60  ;;  %v1665_v44 = vadd.f32 %v1664_v8, %v3043_v39 }
 0x4f8   :  { %v2171_v9 = vpop.eup %2170  ;;  %2182 = vtanh.f32 %v1673_v59 }
 0x4f9   :  { %v2173_v63 = vpop.eup %2172  ;;  %1746 = vst [vmem:[#allocation2 + $0xb0] sm:$0xff] %v2171_v9  ;;  %2184 = vtanh.f32 %v1665_v44 }
 0x4fa   :  { %v2175_v10 = vpop.eup %2174  ;;  %1744 = vst [vmem:[#allocation2 + $0xa0] sm:$0xff] %v2173_v63 }
 0x4fb   :  { %v2177_v41 = vpop.eup %2176  ;;  %1747 = vst [vmem:[#allocation2 + $0xb8] sm:$0xff] %v2175_v10  ;;  %v2078_v29 = vpop.f32.mrb[56].mxu1 }
 0x4fc   :  { %1745 = vst [vmem:[#allocation2 + $0xa8] sm:$0xff] %v2177_v41  ;;  %v1686_v42 = vadd.f32 %v2078_v29, %v3043_v39  ;;  %v1677_v34 = vpop.f32.mrb[57].mxu1 }
 0x4fd   :  { %v1678_v2 = vadd.f32 %v1677_v34, %v3043_v39  ;;  %v2079_v55 = vpop.f32.mrb[58].mxu1 }
 0x4fe   :  { %2186 = vtanh.f32 %v1686_v42  ;;  %v1689_v45 = vadd.f32 %v2079_v55, %v3043_v39  ;;  %v1680_v46 = vpop.f32.mrb[59].mxu1 }
 0x4ff   :  { %2188 = vtanh.f32 %v1678_v2  ;;  %v1681_v15 = vadd.f32 %v1680_v46, %v3043_v39 }
 0x500   :  { %v2179_v17 = vpop.eup %2178  ;;  %2190 = vtanh.f32 %v1689_v45 }
 0x501   :  { %v2181_v53 = vpop.eup %2180  ;;  %1750 = vst [vmem:[#allocation2 + $0xd0] sm:$0xff] %v2179_v17  ;;  %2192 = vtanh.f32 %v1681_v15 }
 0x502   :  { %v2183_v24 = vpop.eup %2182  ;;  %1748 = vst [vmem:[#allocation2 + $0xc0] sm:$0xff] %v2181_v53 }
 0x503   :  { %v2185_v28 = vpop.eup %2184  ;;  %1751 = vst [vmem:[#allocation2 + $0xd8] sm:$0xff] %v2183_v24 }
 0x504   :  { %1749 = vst [vmem:[#allocation2 + $0xc8] sm:$0xff] %v2185_v28 }
 0x508   :  { %v2187_v16 = vpop.eup %2186 }
 0x509   :  { %v2189_v38 = vpop.eup %2188  ;;  %1754 = vst [vmem:[#allocation2 + $0xf0] sm:$0xff] %v2187_v16 }
 0x50a   :  { %v2191_v30 = vpop.eup %2190  ;;  %1752 = vst [vmem:[#allocation2 + $0xe0] sm:$0xff] %v2189_v38 }
 0x50b   :  { %v2193_v13 = vpop.eup %2192  ;;  %1755 = vst [vmem:[#allocation2 + $0xf8] sm:$0xff] %v2191_v30 }
 0x50c   :  { %1753 = vst [vmem:[#allocation2 + $0xe8] sm:$0xff] %v2193_v13 }
 0x50d   :  { %2205 = shalt.err (!%p2202_p4)
}
 0x50e   :  { %s2206_s16 = scalar_lea.hbm %s3095_s6, 4096 }
 0x50f   :  { %p2207_p5 = scmp.ne.s32.totalorder %s3095_s6, %s2206_s16  ;;  %p2210_p6 = scmp.lt.u32.totalorder %s2206_s16, %s3095_s6 }
 0x511   :  { %p2212_p7 = pnand %p2210_p6, %p2207_p5 }
 0x513   :  { %2215 = shalt.err (!%p2212_p7)
}
 0x514   :  { %s2219_s19 = smov 128   ;;  %s2220_s20 = smov 8  }
 0x515   :  { %1767 = dma.vmem_to_hbm [thread:$0]  %s1762_s12, 4096, %s3095_s6, [#allocation3], %s2219_s19, %s2219_s19, %s2220_s20  }
 0x516   :  { %2216 = dma.done.wait [#allocation3], 4096  }
 0x517   :  { %2217 = vsyncadd [#allocation3], 4294963200 }
 0x518   :  { %1771 = vsyncpa [#allocation3], 1 }

</bundles_post_ra>
